<compile_context>
chip_gen: v5e
topology: v5e:2x2
jax: 0.10.0
libtpu: 0.0.40
codegen_flags: <defaults>
</compile_context>

<pallas_src>
import jax
import jax.numpy as jnp
from jax.experimental import pallas as pl
from jax.experimental.pallas import tpu as pltpu

MATMUL_DTYPE = jnp.bfloat16     # dtype of the recurrent (h @ W_hh) MXU operands
TIME_CHUNK_CAP = 32             # max timesteps processed per grid iteration


# ----------------------------------------------------------------------------
# Pallas kernel: one time-chunk of a fused bidirectional GRU layer.
#   gi_*_ref : (TC, B, 3H)  precomputed input projections (b_ih and the r/z
#                           part of b_hh already folded in)
#   whh_*_ref: (H, 3H)      transposed recurrent weights (MATMUL_DTYPE)
#   bhn_*_ref: (1, H)       b_hh for the n gate (must stay attached to gh_n)
#   out_*_ref: (TC, B, H)   per-timestep hidden states of this chunk
#   h*_ref   : (B, H)       f32 VMEM scratch carrying h across grid steps
# ----------------------------------------------------------------------------
def _bigru_chunk_kernel(gi_f_ref, gi_b_ref, whh_f_ref, whh_b_ref,
                        bhn_f_ref, bhn_b_ref, out_f_ref, out_b_ref,
                        hf_ref, hb_ref):
    c = pl.program_id(0)
    TC = gi_f_ref.shape[0]
    H = hf_ref.shape[1]

    @pl.when(c == 0)
    def _():
        hf_ref[...] = jnp.zeros_like(hf_ref)
        hb_ref[...] = jnp.zeros_like(hb_ref)

    # Hoist weight/bias loads out of the per-timestep loop.
    whh_f = whh_f_ref[...]
    whh_b = whh_b_ref[...]
    bhn_f = bhn_f_ref[...]
    bhn_b = bhn_b_ref[...]

    def gru_step(gi, h, whh, bhn):
        # Only the h-matmul remains in the serial recurrence (bf16 MXU, f32 acc).
        gh = jnp.dot(h.astype(whh.dtype), whh,
                     preferred_element_type=jnp.float32)
        r = jax.nn.sigmoid(gi[:, 0:H] + gh[:, 0:H])
        z = jax.nn.sigmoid(gi[:, H:2 * H] + gh[:, H:2 * H])
        n = jnp.tanh(gi[:, 2 * H:3 * H] + r * (gh[:, 2 * H:3 * H] + bhn))
        return (1.0 - z) * n + z * h

    def body(i, carry):
        # forward direction: local index i, global time = c*TC + i
        hf_new = gru_step(gi_f_ref[i], hf_ref[...], whh_f, bhn_f)
        hf_ref[...] = hf_new
        out_f_ref[i] = hf_new.astype(out_f_ref.dtype)

        # backward direction: local index TC-1-i inside chunk NC-1-c, so the
        # global time runs T-1, T-2, ..., 0 across the whole grid.
        j = TC - 1 - i
        hb_new = gru_step(gi_b_ref[j], hb_ref[...], whh_b, bhn_b)
        hb_ref[...] = hb_new
        out_b_ref[j] = hb_new.astype(out_b_ref.dtype)
        return carry

    jax.lax.fori_loop(0, TC, body, 0, unroll=True)


def _choose_time_chunk(T, cap=TIME_CHUNK_CAP):
    for tc in range(min(T, cap), 0, -1):
        if T % tc == 0:
            return tc
    return 1


def _precompute_gi(x_parts, w_ih_t, gi_bias):
    """gi = concat(x_parts, -1) @ w_ih_t + gi_bias, without materializing the concat."""
    acc = None
    off = 0
    for part in x_parts:
        w_slab = w_ih_t[off:off + part.shape[-1]]          # (width, 3H)
        term = jnp.einsum('tbi,ig->tbg', part, w_slab)      # one big matmul
        acc = term if acc is None else acc + term
        off += part.shape[-1]
    return acc + gi_bias


def bigru_layer(x_parts, layer_params):
    """Fused bidirectional GRU layer.

    x_parts: tuple of time-major (T, B, *) arrays whose feature-concat is the
             layer input. Returns (out_fwd, out_bwd), each (T, B, H).
    """
    (wih_f, gib_f, whh_f, bhn_f), (wih_b, gib_b, whh_b, bhn_b) = layer_params
    T, B = x_parts[0].shape[0], x_parts[0].shape[1]
    H = whh_f.shape[0]

    # Input projections for all timesteps / both directions, hoisted out of
    # the serial recurrence (plain XLA matmuls, f32).
    gi_f = _precompute_gi(x_parts, wih_f, gib_f)   # (T, B, 3H)
    gi_b = _precompute_gi(x_parts, wih_b, gib_b)   # (T, B, 3H)

    TC = _choose_time_chunk(T)
    NC = T // TC

    return pl.pallas_call(
        _bigru_chunk_kernel,
        out_shape=(jax.ShapeDtypeStruct((T, B, H), jnp.float32),
                   jax.ShapeDtypeStruct((T, B, H), jnp.float32)),
        grid_spec=pltpu.PrefetchScalarGridSpec(
            num_scalar_prefetch=0,
            grid=(NC,),
            in_specs=[
                pl.BlockSpec((TC, B, 3 * H), lambda c: (c, 0, 0)),
                pl.BlockSpec((TC, B, 3 * H), lambda c: (NC - 1 - c, 0, 0)),
                pl.BlockSpec((H, 3 * H), lambda c: (0, 0)),
                pl.BlockSpec((H, 3 * H), lambda c: (0, 0)),
                pl.BlockSpec((1, H), lambda c: (0, 0)),
                pl.BlockSpec((1, H), lambda c: (0, 0)),
            ],
            out_specs=(
                pl.BlockSpec((TC, B, H), lambda c: (c, 0, 0)),
                pl.BlockSpec((TC, B, H), lambda c: (NC - 1 - c, 0, 0)),
            ),
            scratch_shapes=[pltpu.VMEM((B, H), jnp.float32),
                            pltpu.VMEM((B, H), jnp.float32)],
        ),
        compiler_params=pltpu.CompilerParams(
            dimension_semantics=("arbitrary",)),   # sequential recurrence over time
    )(gi_f, gi_b, whh_f, whh_b, bhn_f, bhn_b)


def prepare_gru_params(raw_params, matmul_dtype=MATMUL_DTYPE):
    """Convert PyTorch-layout GRU params into kernel-ready form (done once).

    raw per direction: w_ih (3H, IN), w_hh (3H, H), b_ih (3H,), b_hh (3H,).
    kernel-ready per direction:
      w_ih_t  (IN, 3H)   f32  -- pre-transposed input weights
      gi_bias (1, 1, 3H) f32  -- b_ih with b_hh folded in for the r/z gates
      w_hh_t  (H, 3H)    matmul_dtype -- pre-transposed recurrent weights
      b_hh_n  (1, H)     f32  -- n-gate recurrent bias (applied inside r*(...))
    """
    prepared = []
    for layer in raw_params:
        dirs = []
        for w_ih, w_hh, b_ih, b_hh in layer:
            H = w_hh.shape[1]
            w_ih_t = jnp.asarray(w_ih, jnp.float32).T
            w_hh_t = jnp.asarray(w_hh, jnp.float32).T.astype(matmul_dtype)
            b_ih = jnp.asarray(b_ih, jnp.float32)
            b_hh = jnp.asarray(b_hh, jnp.float32)
            gi_bias = b_ih.at[:2 * H].add(b_hh[:2 * H]).reshape(1, 1, 3 * H)
            b_hh_n = b_hh[2 * H:].reshape(1, H)
            dirs.append((w_ih_t, gi_bias, w_hh_t, b_hh_n))
        prepared.append(tuple(dirs))
    return prepared


def gru_cond_forward(x, cond_emb, prepared_params):
    """GruCond.forward: 2-layer bidirectional GRU; cond_emb is unused (as in torch)."""
    del cond_emb  # unused by the reference module's forward
    parts = (jnp.transpose(x, (1, 0, 2)),)          # single relayout to time-major
    for layer_params in prepared_params:
        parts = bigru_layer(parts, layer_params)     # (out_fwd, out_bwd)
    out = jnp.concatenate(parts, axis=-1)            # one concat, at the very end
    return jnp.transpose(out, (1, 0, 2))             # back to batch_first (B, T, 2H)


# ----------------------------------------------------------------------------
# Parameter init (shapes match nn.GRU(input_size, hidden, 2, bidirectional=True)).
# TODO(synk): the reference calls an external init_gru() helper (definition not
# provided); PyTorch-default uniform(-1/sqrt(H), 1/sqrt(H)) init is used here.
# ----------------------------------------------------------------------------
def init_gru_params(key, input_size, hidden_size, num_layers=2):
    params = []
    bound = 1.0 / float(hidden_size) ** 0.5
    for layer in range(num_layers):
        layer_in = input_size if layer == 0 else 2 * hidden_size
        dirs = []
        for _ in range(2):  # forward, backward
            key, k0, k1, k2, k3 = jax.random.split(key, 5)
            w_ih = jax.random.uniform(k0, (3 * hidden_size, layer_in),
                                      jnp.float32, -bound, bound)
            w_hh = jax.random.uniform(k1, (3 * hidden_size, hidden_size),
                                      jnp.float32, -bound, bound)
            b_ih = jax.random.uniform(k2, (3 * hidden_size,), jnp.float32, -bound, bound)
            b_hh = jax.random.uniform(k3, (3 * hidden_size,), jnp.float32, -bound, bound)
            dirs.append((w_ih, w_hh, b_ih, b_hh))
        params.append(dirs)
    return params


# ----------------------------------------------------------------------------
# Pure-JAX references (lax.scan) for correctness checking.
# ----------------------------------------------------------------------------
def _ref_gru_dir(x_tbf, w_ih, w_hh, b_ih, b_hh, matmul_dtype=None):
    H = w_hh.shape[1]
    w_hh_t = w_hh.T if matmul_dtype is None else w_hh.T.astype(matmul_dtype)

    def step(h, x_t):
        gi = x_t @ w_ih.T + b_ih
        hm = h if matmul_dtype is None else h.astype(matmul_dtype)
        gh = jnp.dot(hm, w_hh_t, preferred_element_type=jnp.float32) + b_hh
        r = jax.nn.sigmoid(gi[:, :H] + gh[:, :H])
        z = jax.nn.sigmoid(gi[:, H:2 * H] + gh[:, H:2 * H])
        n = jnp.tanh(gi[:, 2 * H:] + r * gh[:, 2 * H:])
        h_new = (1.0 - z) * n + z * h
        return h_new, h_new

    h0 = jnp.zeros((x_tbf.shape[1], H), jnp.float32)
    _, out = jax.lax.scan(step, h0, x_tbf)
    return out


def gru_cond_forward_ref(x, raw_params, matmul_dtype=None):
    h = jnp.transpose(x, (1, 0, 2))
    for layer in raw_params:
        out_f = _ref_gru_dir(h, *layer[0], matmul_dtype=matmul_dtype)
        out_b = _ref_gru_dir(h[::-1], *layer[1], matmul_dtype=matmul_dtype)[::-1]
        h = jnp.concatenate([out_f, out_b], axis=-1)
    return jnp.transpose(h, (1, 0, 2))


if __name__ == "__main__":
    # Small shapes consistent with GruCond(input_size, hidden_size, ...)
    B, T, INPUT_SIZE, HIDDEN, COND = 2, 8, 16, 32, 8

    key = jax.random.PRNGKey(0)
    kx, kc, kp = jax.random.split(key, 3)
    x = jax.random.normal(kx, (B, T, INPUT_SIZE), jnp.float32)
    cond_emb = jax.random.normal(kc, (B, COND), jnp.float32)  # unused by forward
    raw_params = init_gru_params(kp, INPUT_SIZE, HIDDEN, num_layers=2)
    prepared = prepare_gru_params(raw_params, matmul_dtype=MATMUL_DTYPE)

    fwd = jax.jit(gru_cond_forward)
    out = jax.block_until_ready(fwd(x, cond_emb, prepared))
    assert out.shape == (B, T, 2 * HIDDEN), out.shape

    # Tight check vs a reference using the same bf16 recurrent-matmul operands.
    ref_matched = jax.block_until_ready(
        gru_cond_forward_ref(x, raw_params, matmul_dtype=MATMUL_DTYPE))
    err_m = float(jnp.abs(out - ref_matched).max())
    assert jnp.allclose(out, ref_matched, atol=2e-3, rtol=2e-3), err_m

    # Bounded-drift check vs the full-f32 reference (bf16 weight rounding only).
    ref_f32 = jax.block_until_ready(gru_cond_forward_ref(x, raw_params))
    err_f = float(jnp.abs(out - ref_f32).max())
    assert jnp.allclose(out, ref_f32, atol=6e-2, rtol=6e-2), err_f

    print("KERNEL_OK")
</pallas_src>

<mosaic_0001>
module attributes {stable_mosaic.version = 11 : i64} {
  func.func @_bigru_chunk_kernel(%arg0: i32, %arg1: memref<8x2x96xf32, #tpu.memory_space<vmem>>, %arg2: memref<8x2x96xf32, #tpu.memory_space<vmem>>, %arg3: memref<32x96xbf16, #tpu.memory_space<vmem>>, %arg4: memref<32x96xbf16, #tpu.memory_space<vmem>>, %arg5: memref<1x32xf32, #tpu.memory_space<vmem>>, %arg6: memref<1x32xf32, #tpu.memory_space<vmem>>, %arg7: memref<8x2x32xf32, #tpu.memory_space<vmem>>, %arg8: memref<8x2x32xf32, #tpu.memory_space<vmem>>, %arg9: memref<2x32xf32, #tpu.memory_space<vmem>>, %arg10: memref<2x32xf32, #tpu.memory_space<vmem>>) attributes {dimension_semantics = [#tpu.dimension_semantics<arbitrary>], iteration_bounds = array<i64: 1>, scalar_prefetch = 0 : i64, scratch_operands = 2 : i64, tpu.core_type = #tpu.core_type<tc>, window_params = [{transform_indices = @transform_0, window_bounds = array<i64: 8, 2, 96>}, {transform_indices = @transform_1, window_bounds = array<i64: 8, 2, 96>}, {pipeline_mode = #tpu.pipeline_mode<synchronous>, transform_indices = @transform_2, window_bounds = array<i64: 32, 96>}, {pipeline_mode = #tpu.pipeline_mode<synchronous>, transform_indices = @transform_3, window_bounds = array<i64: 32, 96>}, {pipeline_mode = #tpu.pipeline_mode<synchronous>, transform_indices = @transform_4, window_bounds = array<i64: 1, 32>}, {pipeline_mode = #tpu.pipeline_mode<synchronous>, transform_indices = @transform_5, window_bounds = array<i64: 1, 32>}, {transform_indices = @transform_6, window_bounds = array<i64: 8, 2, 32>}, {transform_indices = @transform_7, window_bounds = array<i64: 8, 2, 32>}]} {
    %c0_i32 = arith.constant 0 : i32
    %0 = arith.cmpi eq, %arg0, %c0_i32 : i32
    %1 = arith.extui %0 : i1 to i32
    %c0_i32_0 = arith.constant 0 : i32
    %2 = arith.cmpi ne, %1, %c0_i32_0 : i32
    scf.if %2 {
      %cst_208 = arith.constant 0.000000e+00 : f32
      %639 = vector.broadcast %cst_208 : f32 to vector<2x32xf32>
      %c0_209 = arith.constant 0 : index
      %c0_210 = arith.constant 0 : index
      %640 = vector.load %arg9[%c0_209, %c0_210] : memref<2x32xf32, #tpu.memory_space<vmem>>, vector<2x32xf32>
      tpu.vector_store %arg9[%c0_209, %c0_210], %639 {strides = array<i32>} : memref<2x32xf32, #tpu.memory_space<vmem>>, vector<2x32xf32>,
      %cst_211 = arith.constant 0.000000e+00 : f32
      %641 = vector.broadcast %cst_211 : f32 to vector<2x32xf32>
      %c0_212 = arith.constant 0 : index
      %c0_213 = arith.constant 0 : index
      %642 = vector.load %arg10[%c0_212, %c0_213] : memref<2x32xf32, #tpu.memory_space<vmem>>, vector<2x32xf32>
      tpu.vector_store %arg10[%c0_212, %c0_213], %641 {strides = array<i32>} : memref<2x32xf32, #tpu.memory_space<vmem>>, vector<2x32xf32>,
    } else {
    }
    %c0 = arith.constant 0 : index
    %c0_1 = arith.constant 0 : index
    %3 = vector.load %arg3[%c0, %c0_1] : memref<32x96xbf16, #tpu.memory_space<vmem>>, vector<32x96xbf16>
    %c0_2 = arith.constant 0 : index
    %c0_3 = arith.constant 0 : index
    %4 = vector.load %arg4[%c0_2, %c0_3] : memref<32x96xbf16, #tpu.memory_space<vmem>>, vector<32x96xbf16>
    %c0_4 = arith.constant 0 : index
    %c0_5 = arith.constant 0 : index
    %5 = vector.load %arg5[%c0_4, %c0_5] : memref<1x32xf32, #tpu.memory_space<vmem>>, vector<1x32xf32>
    %c0_6 = arith.constant 0 : index
    %c0_7 = arith.constant 0 : index
    %6 = vector.load %arg6[%c0_6, %c0_7] : memref<1x32xf32, #tpu.memory_space<vmem>>, vector<1x32xf32>
    %c0_i32_8 = arith.constant 0 : i32
    %7 = arith.index_cast %c0_i32_8 : i32 to index
    %c0_9 = arith.constant 0 : index
    %c0_10 = arith.constant 0 : index
    %8 = vector.load %arg1[%7, %c0_9, %c0_10] : memref<8x2x96xf32, #tpu.memory_space<vmem>>, vector<1x2x96xf32>
    %9 = vector.shape_cast %8 : vector<1x2x96xf32> to vector<2x96xf32>
    %c0_11 = arith.constant 0 : index
    %c0_12 = arith.constant 0 : index
    %10 = vector.load %arg9[%c0_11, %c0_12] : memref<2x32xf32, #tpu.memory_space<vmem>>, vector<2x32xf32>
    %11 = arith.truncf %10 : vector<2x32xf32> to vector<2x32xbf16>
    %cst = arith.constant dense<0.000000e+00> : vector<2x96xf32>
    %12 = tpu.matmul %11, %3, %cst {dimension_numbers = #tpu.dot_dimension_numbers<[1], [0], [0], [1], [0, 0, 1, 1], [], []>} : vector<2x32xbf16>, vector<32x96xbf16>, vector<2x96xf32> -> vector<2x96xf32>
    %13 = vector.extract_strided_slice %9 {offsets = [0, 0], sizes = [2, 32], strides = [1, 1]} : vector<2x96xf32> to vector<2x32xf32>
    %14 = vector.extract_strided_slice %12 {offsets = [0, 0], sizes = [2, 32], strides = [1, 1]} : vector<2x96xf32> to vector<2x32xf32>
    %15 = arith.addf %13, %14 : vector<2x32xf32>
    %16 = arith.negf %15 : vector<2x32xf32>
    %17 = math.exp %16 : vector<2x32xf32>
    %cst_13 = arith.constant 1.000000e+00 : f32
    %18 = vector.broadcast %cst_13 : f32 to vector<2x32xf32>
    %19 = arith.addf %18, %17 : vector<2x32xf32>
    %20 = arith.divf %18, %19 : vector<2x32xf32>
    %21 = vector.extract_strided_slice %9 {offsets = [0, 32], sizes = [2, 32], strides = [1, 1]} : vector<2x96xf32> to vector<2x32xf32>
    %22 = vector.extract_strided_slice %12 {offsets = [0, 32], sizes = [2, 32], strides = [1, 1]} : vector<2x96xf32> to vector<2x32xf32>
    %23 = arith.addf %21, %22 : vector<2x32xf32>
    %24 = arith.negf %23 : vector<2x32xf32>
    %25 = math.exp %24 : vector<2x32xf32>
    %cst_14 = arith.constant 1.000000e+00 : f32
    %26 = vector.broadcast %cst_14 : f32 to vector<2x32xf32>
    %27 = arith.addf %26, %25 : vector<2x32xf32>
    %28 = arith.divf %26, %27 : vector<2x32xf32>
    %29 = vector.extract_strided_slice %9 {offsets = [0, 64], sizes = [2, 32], strides = [1, 1]} : vector<2x96xf32> to vector<2x32xf32>
    %30 = vector.extract_strided_slice %12 {offsets = [0, 64], sizes = [2, 32], strides = [1, 1]} : vector<2x96xf32> to vector<2x32xf32>
    %31 = vector.broadcast %5 : vector<1x32xf32> to vector<2x32xf32>
    %32 = arith.addf %30, %31 : vector<2x32xf32>
    %33 = arith.mulf %20, %32 : vector<2x32xf32>
    %34 = arith.addf %29, %33 : vector<2x32xf32>
    %35 = math.tanh %34 : vector<2x32xf32>
    %cst_15 = arith.constant 1.000000e+00 : f32
    %36 = vector.broadcast %cst_15 : f32 to vector<2x32xf32>
    %37 = arith.subf %36, %28 : vector<2x32xf32>
    %38 = arith.mulf %37, %35 : vector<2x32xf32>
    %39 = arith.mulf %28, %10 : vector<2x32xf32>
    %40 = arith.addf %38, %39 : vector<2x32xf32>
    %c0_16 = arith.constant 0 : index
    %c0_17 = arith.constant 0 : index
    %41 = vector.load %arg9[%c0_16, %c0_17] : memref<2x32xf32, #tpu.memory_space<vmem>>, vector<2x32xf32>
    tpu.vector_store %arg9[%c0_16, %c0_17], %40 {strides = array<i32>} : memref<2x32xf32, #tpu.memory_space<vmem>>, vector<2x32xf32>,
    %42 = arith.index_cast %c0_i32_8 : i32 to index
    %c0_18 = arith.constant 0 : index
    %c0_19 = arith.constant 0 : index
    %43 = vector.load %arg7[%42, %c0_18, %c0_19] : memref<8x2x32xf32, #tpu.memory_space<vmem>>, vector<1x2x32xf32>
    %44 = vector.shape_cast %43 : vector<1x2x32xf32> to vector<2x32xf32>
    %45 = vector.shape_cast %40 : vector<2x32xf32> to vector<1x2x32xf32>
    tpu.vector_store %arg7[%42, %c0_18, %c0_19], %45 {strides = array<i32>} : memref<8x2x32xf32, #tpu.memory_space<vmem>>, vector<1x2x32xf32>,
    %c7_i32 = arith.constant 7 : i32
    %46 = arith.subi %c7_i32, %c0_i32_8 : i32
    %47 = arith.index_cast %46 : i32 to index
    %c0_20 = arith.constant 0 : index
    %c0_21 = arith.constant 0 : index
    %48 = vector.load %arg2[%47, %c0_20, %c0_21] : memref<8x2x96xf32, #tpu.memory_space<vmem>>, vector<1x2x96xf32>
    %49 = vector.shape_cast %48 : vector<1x2x96xf32> to vector<2x96xf32>
    %c0_22 = arith.constant 0 : index
    %c0_23 = arith.constant 0 : index
    %50 = vector.load %arg10[%c0_22, %c0_23] : memref<2x32xf32, #tpu.memory_space<vmem>>, vector<2x32xf32>
    %51 = arith.truncf %50 : vector<2x32xf32> to vector<2x32xbf16>
    %cst_24 = arith.constant dense<0.000000e+00> : vector<2x96xf32>
    %52 = tpu.matmul %51, %4, %cst_24 {dimension_numbers = #tpu.dot_dimension_numbers<[1], [0], [0], [1], [0, 0, 1, 1], [], []>} : vector<2x32xbf16>, vector<32x96xbf16>, vector<2x96xf32> -> vector<2x96xf32>
    %53 = vector.extract_strided_slice %49 {offsets = [0, 0], sizes = [2, 32], strides = [1, 1]} : vector<2x96xf32> to vector<2x32xf32>
    %54 = vector.extract_strided_slice %52 {offsets = [0, 0], sizes = [2, 32], strides = [1, 1]} : vector<2x96xf32> to vector<2x32xf32>
    %55 = arith.addf %53, %54 : vector<2x32xf32>
    %56 = arith.negf %55 : vector<2x32xf32>
    %57 = math.exp %56 : vector<2x32xf32>
    %cst_25 = arith.constant 1.000000e+00 : f32
    %58 = vector.broadcast %cst_25 : f32 to vector<2x32xf32>
    %59 = arith.addf %58, %57 : vector<2x32xf32>
    %60 = arith.divf %58, %59 : vector<2x32xf32>
    %61 = vector.extract_strided_slice %49 {offsets = [0, 32], sizes = [2, 32], strides = [1, 1]} : vector<2x96xf32> to vector<2x32xf32>
    %62 = vector.extract_strided_slice %52 {offsets = [0, 32], sizes = [2, 32], strides = [1, 1]} : vector<2x96xf32> to vector<2x32xf32>
    %63 = arith.addf %61, %62 : vector<2x32xf32>
    %64 = arith.negf %63 : vector<2x32xf32>
    %65 = math.exp %64 : vector<2x32xf32>
    %cst_26 = arith.constant 1.000000e+00 : f32
    %66 = vector.broadcast %cst_26 : f32 to vector<2x32xf32>
    %67 = arith.addf %66, %65 : vector<2x32xf32>
    %68 = arith.divf %66, %67 : vector<2x32xf32>
    %69 = vector.extract_strided_slice %49 {offsets = [0, 64], sizes = [2, 32], strides = [1, 1]} : vector<2x96xf32> to vector<2x32xf32>
    %70 = vector.extract_strided_slice %52 {offsets = [0, 64], sizes = [2, 32], strides = [1, 1]} : vector<2x96xf32> to vector<2x32xf32>
    %71 = vector.broadcast %6 : vector<1x32xf32> to vector<2x32xf32>
    %72 = arith.addf %70, %71 : vector<2x32xf32>
    %73 = arith.mulf %60, %72 : vector<2x32xf32>
    %74 = arith.addf %69, %73 : vector<2x32xf32>
    %75 = math.tanh %74 : vector<2x32xf32>
    %cst_27 = arith.constant 1.000000e+00 : f32
    %76 = vector.broadcast %cst_27 : f32 to vector<2x32xf32>
    %77 = arith.subf %76, %68 : vector<2x32xf32>
    %78 = arith.mulf %77, %75 : vector<2x32xf32>
    %79 = arith.mulf %68, %50 : vector<2x32xf32>
    %80 = arith.addf %78, %79 : vector<2x32xf32>
    %c0_28 = arith.constant 0 : index
    %c0_29 = arith.constant 0 : index
    %81 = vector.load %arg10[%c0_28, %c0_29] : memref<2x32xf32, #tpu.memory_space<vmem>>, vector<2x32xf32>
    tpu.vector_store %arg10[%c0_28, %c0_29], %80 {strides = array<i32>} : memref<2x32xf32, #tpu.memory_space<vmem>>, vector<2x32xf32>,
    %82 = arith.index_cast %46 : i32 to index
    %c0_30 = arith.constant 0 : index
    %c0_31 = arith.constant 0 : index
    %83 = vector.load %arg8[%82, %c0_30, %c0_31] : memref<8x2x32xf32, #tpu.memory_space<vmem>>, vector<1x2x32xf32>
    %84 = vector.shape_cast %83 : vector<1x2x32xf32> to vector<2x32xf32>
    %85 = vector.shape_cast %80 : vector<2x32xf32> to vector<1x2x32xf32>
    tpu.vector_store %arg8[%82, %c0_30, %c0_31], %85 {strides = array<i32>} : memref<8x2x32xf32, #tpu.memory_space<vmem>>, vector<1x2x32xf32>,
    %c1_i32 = arith.constant 1 : i32
    %86 = arith.index_cast %c1_i32 : i32 to index
    %c0_32 = arith.constant 0 : index
    %c0_33 = arith.constant 0 : index
    %87 = vector.load %arg1[%86, %c0_32, %c0_33] : memref<8x2x96xf32, #tpu.memory_space<vmem>>, vector<1x2x96xf32>
    %88 = vector.shape_cast %87 : vector<1x2x96xf32> to vector<2x96xf32>
    %c0_34 = arith.constant 0 : index
    %c0_35 = arith.constant 0 : index
    %89 = vector.load %arg9[%c0_34, %c0_35] : memref<2x32xf32, #tpu.memory_space<vmem>>, vector<2x32xf32>
    %90 = arith.truncf %89 : vector<2x32xf32> to vector<2x32xbf16>
    %cst_36 = arith.constant dense<0.000000e+00> : vector<2x96xf32>
    %91 = tpu.matmul %90, %3, %cst_36 {dimension_numbers = #tpu.dot_dimension_numbers<[1], [0], [0], [1], [0, 0, 1, 1], [], []>} : vector<2x32xbf16>, vector<32x96xbf16>, vector<2x96xf32> -> vector<2x96xf32>
    %92 = vector.extract_strided_slice %88 {offsets = [0, 0], sizes = [2, 32], strides = [1, 1]} : vector<2x96xf32> to vector<2x32xf32>
    %93 = vector.extract_strided_slice %91 {offsets = [0, 0], sizes = [2, 32], strides = [1, 1]} : vector<2x96xf32> to vector<2x32xf32>
    %94 = arith.addf %92, %93 : vector<2x32xf32>
    %95 = arith.negf %94 : vector<2x32xf32>
    %96 = math.exp %95 : vector<2x32xf32>
    %cst_37 = arith.constant 1.000000e+00 : f32
    %97 = vector.broadcast %cst_37 : f32 to vector<2x32xf32>
    %98 = arith.addf %97, %96 : vector<2x32xf32>
    %99 = arith.divf %97, %98 : vector<2x32xf32>
    %100 = vector.extract_strided_slice %88 {offsets = [0, 32], sizes = [2, 32], strides = [1, 1]} : vector<2x96xf32> to vector<2x32xf32>
    %101 = vector.extract_strided_slice %91 {offsets = [0, 32], sizes = [2, 32], strides = [1, 1]} : vector<2x96xf32> to vector<2x32xf32>
    %102 = arith.addf %100, %101 : vector<2x32xf32>
    %103 = arith.negf %102 : vector<2x32xf32>
    %104 = math.exp %103 : vector<2x32xf32>
    %cst_38 = arith.constant 1.000000e+00 : f32
    %105 = vector.broadcast %cst_38 : f32 to vector<2x32xf32>
    %106 = arith.addf %105, %104 : vector<2x32xf32>
    %107 = arith.divf %105, %106 : vector<2x32xf32>
    %108 = vector.extract_strided_slice %88 {offsets = [0, 64], sizes = [2, 32], strides = [1, 1]} : vector<2x96xf32> to vector<2x32xf32>
    %109 = vector.extract_strided_slice %91 {offsets = [0, 64], sizes = [2, 32], strides = [1, 1]} : vector<2x96xf32> to vector<2x32xf32>
    %110 = vector.broadcast %5 : vector<1x32xf32> to vector<2x32xf32>
    %111 = arith.addf %109, %110 : vector<2x32xf32>
    %112 = arith.mulf %99, %111 : vector<2x32xf32>
    %113 = arith.addf %108, %112 : vector<2x32xf32>
    %114 = math.tanh %113 : vector<2x32xf32>
    %cst_39 = arith.constant 1.000000e+00 : f32
    %115 = vector.broadcast %cst_39 : f32 to vector<2x32xf32>
    %116 = arith.subf %115, %107 : vector<2x32xf32>
    %117 = arith.mulf %116, %114 : vector<2x32xf32>
    %118 = arith.mulf %107, %89 : vector<2x32xf32>
    %119 = arith.addf %117, %118 : vector<2x32xf32>
    %c0_40 = arith.constant 0 : index
    %c0_41 = arith.constant 0 : index
    %120 = vector.load %arg9[%c0_40, %c0_41] : memref<2x32xf32, #tpu.memory_space<vmem>>, vector<2x32xf32>
    tpu.vector_store %arg9[%c0_40, %c0_41], %119 {strides = array<i32>} : memref<2x32xf32, #tpu.memory_space<vmem>>, vector<2x32xf32>,
    %121 = arith.index_cast %c1_i32 : i32 to index
    %c0_42 = arith.constant 0 : index
    %c0_43 = arith.constant 0 : index
    %122 = vector.load %arg7[%121, %c0_42, %c0_43] : memref<8x2x32xf32, #tpu.memory_space<vmem>>, vector<1x2x32xf32>
    %123 = vector.shape_cast %122 : vector<1x2x32xf32> to vector<2x32xf32>
    %124 = vector.shape_cast %119 : vector<2x32xf32> to vector<1x2x32xf32>
    tpu.vector_store %arg7[%121, %c0_42, %c0_43], %124 {strides = array<i32>} : memref<8x2x32xf32, #tpu.memory_space<vmem>>, vector<1x2x32xf32>,
    %c7_i32_44 = arith.constant 7 : i32
    %125 = arith.subi %c7_i32_44, %c1_i32 : i32
    %126 = arith.index_cast %125 : i32 to index
    %c0_45 = arith.constant 0 : index
    %c0_46 = arith.constant 0 : index
    %127 = vector.load %arg2[%126, %c0_45, %c0_46] : memref<8x2x96xf32, #tpu.memory_space<vmem>>, vector<1x2x96xf32>
    %128 = vector.shape_cast %127 : vector<1x2x96xf32> to vector<2x96xf32>
    %c0_47 = arith.constant 0 : index
    %c0_48 = arith.constant 0 : index
    %129 = vector.load %arg10[%c0_47, %c0_48] : memref<2x32xf32, #tpu.memory_space<vmem>>, vector<2x32xf32>
    %130 = arith.truncf %129 : vector<2x32xf32> to vector<2x32xbf16>
    %cst_49 = arith.constant dense<0.000000e+00> : vector<2x96xf32>
    %131 = tpu.matmul %130, %4, %cst_49 {dimension_numbers = #tpu.dot_dimension_numbers<[1], [0], [0], [1], [0, 0, 1, 1], [], []>} : vector<2x32xbf16>, vector<32x96xbf16>, vector<2x96xf32> -> vector<2x96xf32>
    %132 = vector.extract_strided_slice %128 {offsets = [0, 0], sizes = [2, 32], strides = [1, 1]} : vector<2x96xf32> to vector<2x32xf32>
    %133 = vector.extract_strided_slice %131 {offsets = [0, 0], sizes = [2, 32], strides = [1, 1]} : vector<2x96xf32> to vector<2x32xf32>
    %134 = arith.addf %132, %133 : vector<2x32xf32>
    %135 = arith.negf %134 : vector<2x32xf32>
    %136 = math.exp %135 : vector<2x32xf32>
    %cst_50 = arith.constant 1.000000e+00 : f32
    %137 = vector.broadcast %cst_50 : f32 to vector<2x32xf32>
    %138 = arith.addf %137, %136 : vector<2x32xf32>
    %139 = arith.divf %137, %138 : vector<2x32xf32>
    %140 = vector.extract_strided_slice %128 {offsets = [0, 32], sizes = [2, 32], strides = [1, 1]} : vector<2x96xf32> to vector<2x32xf32>
    %141 = vector.extract_strided_slice %131 {offsets = [0, 32], sizes = [2, 32], strides = [1, 1]} : vector<2x96xf32> to vector<2x32xf32>
    %142 = arith.addf %140, %141 : vector<2x32xf32>
    %143 = arith.negf %142 : vector<2x32xf32>
    %144 = math.exp %143 : vector<2x32xf32>
    %cst_51 = arith.constant 1.000000e+00 : f32
    %145 = vector.broadcast %cst_51 : f32 to vector<2x32xf32>
    %146 = arith.addf %145, %144 : vector<2x32xf32>
    %147 = arith.divf %145, %146 : vector<2x32xf32>
    %148 = vector.extract_strided_slice %128 {offsets = [0, 64], sizes = [2, 32], strides = [1, 1]} : vector<2x96xf32> to vector<2x32xf32>
    %149 = vector.extract_strided_slice %131 {offsets = [0, 64], sizes = [2, 32], strides = [1, 1]} : vector<2x96xf32> to vector<2x32xf32>
    %150 = vector.broadcast %6 : vector<1x32xf32> to vector<2x32xf32>
    %151 = arith.addf %149, %150 : vector<2x32xf32>
    %152 = arith.mulf %139, %151 : vector<2x32xf32>
    %153 = arith.addf %148, %152 : vector<2x32xf32>
    %154 = math.tanh %153 : vector<2x32xf32>
    %cst_52 = arith.constant 1.000000e+00 : f32
    %155 = vector.broadcast %cst_52 : f32 to vector<2x32xf32>
    %156 = arith.subf %155, %147 : vector<2x32xf32>
    %157 = arith.mulf %156, %154 : vector<2x32xf32>
    %158 = arith.mulf %147, %129 : vector<2x32xf32>
    %159 = arith.addf %157, %158 : vector<2x32xf32>
    %c0_53 = arith.constant 0 : index
    %c0_54 = arith.constant 0 : index
    %160 = vector.load %arg10[%c0_53, %c0_54] : memref<2x32xf32, #tpu.memory_space<vmem>>, vector<2x32xf32>
    tpu.vector_store %arg10[%c0_53, %c0_54], %159 {strides = array<i32>} : memref<2x32xf32, #tpu.memory_space<vmem>>, vector<2x32xf32>,
    %161 = arith.index_cast %125 : i32 to index
    %c0_55 = arith.constant 0 : index
    %c0_56 = arith.constant 0 : index
    %162 = vector.load %arg8[%161, %c0_55, %c0_56] : memref<8x2x32xf32, #tpu.memory_space<vmem>>, vector<1x2x32xf32>
    %163 = vector.shape_cast %162 : vector<1x2x32xf32> to vector<2x32xf32>
    %164 = vector.shape_cast %159 : vector<2x32xf32> to vector<1x2x32xf32>
    tpu.vector_store %arg8[%161, %c0_55, %c0_56], %164 {strides = array<i32>} : memref<8x2x32xf32, #tpu.memory_space<vmem>>, vector<1x2x32xf32>,
    %c2_i32 = arith.constant 2 : i32
    %165 = arith.index_cast %c2_i32 : i32 to index
    %c0_57 = arith.constant 0 : index
    %c0_58 = arith.constant 0 : index
    %166 = vector.load %arg1[%165, %c0_57, %c0_58] : memref<8x2x96xf32, #tpu.memory_space<vmem>>, vector<1x2x96xf32>
    %167 = vector.shape_cast %166 : vector<1x2x96xf32> to vector<2x96xf32>
    %c0_59 = arith.constant 0 : index
    %c0_60 = arith.constant 0 : index
    %168 = vector.load %arg9[%c0_59, %c0_60] : memref<2x32xf32, #tpu.memory_space<vmem>>, vector<2x32xf32>
    %169 = arith.truncf %168 : vector<2x32xf32> to vector<2x32xbf16>
    %cst_61 = arith.constant dense<0.000000e+00> : vector<2x96xf32>
    %170 = tpu.matmul %169, %3, %cst_61 {dimension_numbers = #tpu.dot_dimension_numbers<[1], [0], [0], [1], [0, 0, 1, 1], [], []>} : vector<2x32xbf16>, vector<32x96xbf16>, vector<2x96xf32> -> vector<2x96xf32>
    %171 = vector.extract_strided_slice %167 {offsets = [0, 0], sizes = [2, 32], strides = [1, 1]} : vector<2x96xf32> to vector<2x32xf32>
    %172 = vector.extract_strided_slice %170 {offsets = [0, 0], sizes = [2, 32], strides = [1, 1]} : vector<2x96xf32> to vector<2x32xf32>
    %173 = arith.addf %171, %172 : vector<2x32xf32>
    %174 = arith.negf %173 : vector<2x32xf32>
    %175 = math.exp %174 : vector<2x32xf32>
    %cst_62 = arith.constant 1.000000e+00 : f32
    %176 = vector.broadcast %cst_62 : f32 to vector<2x32xf32>
    %177 = arith.addf %176, %175 : vector<2x32xf32>
    %178 = arith.divf %176, %177 : vector<2x32xf32>
    %179 = vector.extract_strided_slice %167 {offsets = [0, 32], sizes = [2, 32], strides = [1, 1]} : vector<2x96xf32> to vector<2x32xf32>
    %180 = vector.extract_strided_slice %170 {offsets = [0, 32], sizes = [2, 32], strides = [1, 1]} : vector<2x96xf32> to vector<2x32xf32>
    %181 = arith.addf %179, %180 : vector<2x32xf32>
    %182 = arith.negf %181 : vector<2x32xf32>
    %183 = math.exp %182 : vector<2x32xf32>
    %cst_63 = arith.constant 1.000000e+00 : f32
    %184 = vector.broadcast %cst_63 : f32 to vector<2x32xf32>
    %185 = arith.addf %184, %183 : vector<2x32xf32>
    %186 = arith.divf %184, %185 : vector<2x32xf32>
    %187 = vector.extract_strided_slice %167 {offsets = [0, 64], sizes = [2, 32], strides = [1, 1]} : vector<2x96xf32> to vector<2x32xf32>
    %188 = vector.extract_strided_slice %170 {offsets = [0, 64], sizes = [2, 32], strides = [1, 1]} : vector<2x96xf32> to vector<2x32xf32>
    %189 = vector.broadcast %5 : vector<1x32xf32> to vector<2x32xf32>
    %190 = arith.addf %188, %189 : vector<2x32xf32>
    %191 = arith.mulf %178, %190 : vector<2x32xf32>
    %192 = arith.addf %187, %191 : vector<2x32xf32>
    %193 = math.tanh %192 : vector<2x32xf32>
    %cst_64 = arith.constant 1.000000e+00 : f32
    %194 = vector.broadcast %cst_64 : f32 to vector<2x32xf32>
    %195 = arith.subf %194, %186 : vector<2x32xf32>
    %196 = arith.mulf %195, %193 : vector<2x32xf32>
    %197 = arith.mulf %186, %168 : vector<2x32xf32>
    %198 = arith.addf %196, %197 : vector<2x32xf32>
    %c0_65 = arith.constant 0 : index
    %c0_66 = arith.constant 0 : index
    %199 = vector.load %arg9[%c0_65, %c0_66] : memref<2x32xf32, #tpu.memory_space<vmem>>, vector<2x32xf32>
    tpu.vector_store %arg9[%c0_65, %c0_66], %198 {strides = array<i32>} : memref<2x32xf32, #tpu.memory_space<vmem>>, vector<2x32xf32>,
    %200 = arith.index_cast %c2_i32 : i32 to index
    %c0_67 = arith.constant 0 : index
    %c0_68 = arith.constant 0 : index
    %201 = vector.load %arg7[%200, %c0_67, %c0_68] : memref<8x2x32xf32, #tpu.memory_space<vmem>>, vector<1x2x32xf32>
    %202 = vector.shape_cast %201 : vector<1x2x32xf32> to vector<2x32xf32>
    %203 = vector.shape_cast %198 : vector<2x32xf32> to vector<1x2x32xf32>
    tpu.vector_store %arg7[%200, %c0_67, %c0_68], %203 {strides = array<i32>} : memref<8x2x32xf32, #tpu.memory_space<vmem>>, vector<1x2x32xf32>,
    %c7_i32_69 = arith.constant 7 : i32
    %204 = arith.subi %c7_i32_69, %c2_i32 : i32
    %205 = arith.index_cast %204 : i32 to index
    %c0_70 = arith.constant 0 : index
    %c0_71 = arith.constant 0 : index
    %206 = vector.load %arg2[%205, %c0_70, %c0_71] : memref<8x2x96xf32, #tpu.memory_space<vmem>>, vector<1x2x96xf32>
    %207 = vector.shape_cast %206 : vector<1x2x96xf32> to vector<2x96xf32>
    %c0_72 = arith.constant 0 : index
    %c0_73 = arith.constant 0 : index
    %208 = vector.load %arg10[%c0_72, %c0_73] : memref<2x32xf32, #tpu.memory_space<vmem>>, vector<2x32xf32>
    %209 = arith.truncf %208 : vector<2x32xf32> to vector<2x32xbf16>
    %cst_74 = arith.constant dense<0.000000e+00> : vector<2x96xf32>
    %210 = tpu.matmul %209, %4, %cst_74 {dimension_numbers = #tpu.dot_dimension_numbers<[1], [0], [0], [1], [0, 0, 1, 1], [], []>} : vector<2x32xbf16>, vector<32x96xbf16>, vector<2x96xf32> -> vector<2x96xf32>
    %211 = vector.extract_strided_slice %207 {offsets = [0, 0], sizes = [2, 32], strides = [1, 1]} : vector<2x96xf32> to vector<2x32xf32>
    %212 = vector.extract_strided_slice %210 {offsets = [0, 0], sizes = [2, 32], strides = [1, 1]} : vector<2x96xf32> to vector<2x32xf32>
    %213 = arith.addf %211, %212 : vector<2x32xf32>
    %214 = arith.negf %213 : vector<2x32xf32>
    %215 = math.exp %214 : vector<2x32xf32>
    %cst_75 = arith.constant 1.000000e+00 : f32
    %216 = vector.broadcast %cst_75 : f32 to vector<2x32xf32>
    %217 = arith.addf %216, %215 : vector<2x32xf32>
    %218 = arith.divf %216, %217 : vector<2x32xf32>
    %219 = vector.extract_strided_slice %207 {offsets = [0, 32], sizes = [2, 32], strides = [1, 1]} : vector<2x96xf32> to vector<2x32xf32>
    %220 = vector.extract_strided_slice %210 {offsets = [0, 32], sizes = [2, 32], strides = [1, 1]} : vector<2x96xf32> to vector<2x32xf32>
    %221 = arith.addf %219, %220 : vector<2x32xf32>
    %222 = arith.negf %221 : vector<2x32xf32>
    %223 = math.exp %222 : vector<2x32xf32>
    %cst_76 = arith.constant 1.000000e+00 : f32
    %224 = vector.broadcast %cst_76 : f32 to vector<2x32xf32>
    %225 = arith.addf %224, %223 : vector<2x32xf32>
    %226 = arith.divf %224, %225 : vector<2x32xf32>
    %227 = vector.extract_strided_slice %207 {offsets = [0, 64], sizes = [2, 32], strides = [1, 1]} : vector<2x96xf32> to vector<2x32xf32>
    %228 = vector.extract_strided_slice %210 {offsets = [0, 64], sizes = [2, 32], strides = [1, 1]} : vector<2x96xf32> to vector<2x32xf32>
    %229 = vector.broadcast %6 : vector<1x32xf32> to vector<2x32xf32>
    %230 = arith.addf %228, %229 : vector<2x32xf32>
    %231 = arith.mulf %218, %230 : vector<2x32xf32>
    %232 = arith.addf %227, %231 : vector<2x32xf32>
    %233 = math.tanh %232 : vector<2x32xf32>
    %cst_77 = arith.constant 1.000000e+00 : f32
    %234 = vector.broadcast %cst_77 : f32 to vector<2x32xf32>
    %235 = arith.subf %234, %226 : vector<2x32xf32>
    %236 = arith.mulf %235, %233 : vector<2x32xf32>
    %237 = arith.mulf %226, %208 : vector<2x32xf32>
    %238 = arith.addf %236, %237 : vector<2x32xf32>
    %c0_78 = arith.constant 0 : index
    %c0_79 = arith.constant 0 : index
    %239 = vector.load %arg10[%c0_78, %c0_79] : memref<2x32xf32, #tpu.memory_space<vmem>>, vector<2x32xf32>
    tpu.vector_store %arg10[%c0_78, %c0_79], %238 {strides = array<i32>} : memref<2x32xf32, #tpu.memory_space<vmem>>, vector<2x32xf32>,
    %240 = arith.index_cast %204 : i32 to index
    %c0_80 = arith.constant 0 : index
    %c0_81 = arith.constant 0 : index
    %241 = vector.load %arg8[%240, %c0_80, %c0_81] : memref<8x2x32xf32, #tpu.memory_space<vmem>>, vector<1x2x32xf32>
    %242 = vector.shape_cast %241 : vector<1x2x32xf32> to vector<2x32xf32>
    %243 = vector.shape_cast %238 : vector<2x32xf32> to vector<1x2x32xf32>
    tpu.vector_store %arg8[%240, %c0_80, %c0_81], %243 {strides = array<i32>} : memref<8x2x32xf32, #tpu.memory_space<vmem>>, vector<1x2x32xf32>,
    %c3_i32 = arith.constant 3 : i32
    %244 = arith.index_cast %c3_i32 : i32 to index
    %c0_82 = arith.constant 0 : index
    %c0_83 = arith.constant 0 : index
    %245 = vector.load %arg1[%244, %c0_82, %c0_83] : memref<8x2x96xf32, #tpu.memory_space<vmem>>, vector<1x2x96xf32>
    %246 = vector.shape_cast %245 : vector<1x2x96xf32> to vector<2x96xf32>
    %c0_84 = arith.constant 0 : index
    %c0_85 = arith.constant 0 : index
    %247 = vector.load %arg9[%c0_84, %c0_85] : memref<2x32xf32, #tpu.memory_space<vmem>>, vector<2x32xf32>
    %248 = arith.truncf %247 : vector<2x32xf32> to vector<2x32xbf16>
    %cst_86 = arith.constant dense<0.000000e+00> : vector<2x96xf32>
    %249 = tpu.matmul %248, %3, %cst_86 {dimension_numbers = #tpu.dot_dimension_numbers<[1], [0], [0], [1], [0, 0, 1, 1], [], []>} : vector<2x32xbf16>, vector<32x96xbf16>, vector<2x96xf32> -> vector<2x96xf32>
    %250 = vector.extract_strided_slice %246 {offsets = [0, 0], sizes = [2, 32], strides = [1, 1]} : vector<2x96xf32> to vector<2x32xf32>
    %251 = vector.extract_strided_slice %249 {offsets = [0, 0], sizes = [2, 32], strides = [1, 1]} : vector<2x96xf32> to vector<2x32xf32>
    %252 = arith.addf %250, %251 : vector<2x32xf32>
    %253 = arith.negf %252 : vector<2x32xf32>
    %254 = math.exp %253 : vector<2x32xf32>
    %cst_87 = arith.constant 1.000000e+00 : f32
    %255 = vector.broadcast %cst_87 : f32 to vector<2x32xf32>
    %256 = arith.addf %255, %254 : vector<2x32xf32>
    %257 = arith.divf %255, %256 : vector<2x32xf32>
    %258 = vector.extract_strided_slice %246 {offsets = [0, 32], sizes = [2, 32], strides = [1, 1]} : vector<2x96xf32> to vector<2x32xf32>
    %259 = vector.extract_strided_slice %249 {offsets = [0, 32], sizes = [2, 32], strides = [1, 1]} : vector<2x96xf32> to vector<2x32xf32>
    %260 = arith.addf %258, %259 : vector<2x32xf32>
    %261 = arith.negf %260 : vector<2x32xf32>
    %262 = math.exp %261 : vector<2x32xf32>
    %cst_88 = arith.constant 1.000000e+00 : f32
    %263 = vector.broadcast %cst_88 : f32 to vector<2x32xf32>
    %264 = arith.addf %263, %262 : vector<2x32xf32>
    %265 = arith.divf %263, %264 : vector<2x32xf32>
    %266 = vector.extract_strided_slice %246 {offsets = [0, 64], sizes = [2, 32], strides = [1, 1]} : vector<2x96xf32> to vector<2x32xf32>
    %267 = vector.extract_strided_slice %249 {offsets = [0, 64], sizes = [2, 32], strides = [1, 1]} : vector<2x96xf32> to vector<2x32xf32>
    %268 = vector.broadcast %5 : vector<1x32xf32> to vector<2x32xf32>
    %269 = arith.addf %267, %268 : vector<2x32xf32>
    %270 = arith.mulf %257, %269 : vector<2x32xf32>
    %271 = arith.addf %266, %270 : vector<2x32xf32>
    %272 = math.tanh %271 : vector<2x32xf32>
    %cst_89 = arith.constant 1.000000e+00 : f32
    %273 = vector.broadcast %cst_89 : f32 to vector<2x32xf32>
    %274 = arith.subf %273, %265 : vector<2x32xf32>
    %275 = arith.mulf %274, %272 : vector<2x32xf32>
    %276 = arith.mulf %265, %247 : vector<2x32xf32>
    %277 = arith.addf %275, %276 : vector<2x32xf32>
    %c0_90 = arith.constant 0 : index
    %c0_91 = arith.constant 0 : index
    %278 = vector.load %arg9[%c0_90, %c0_91] : memref<2x32xf32, #tpu.memory_space<vmem>>, vector<2x32xf32>
    tpu.vector_store %arg9[%c0_90, %c0_91], %277 {strides = array<i32>} : memref<2x32xf32, #tpu.memory_space<vmem>>, vector<2x32xf32>,
    %279 = arith.index_cast %c3_i32 : i32 to index
    %c0_92 = arith.constant 0 : index
    %c0_93 = arith.constant 0 : index
    %280 = vector.load %arg7[%279, %c0_92, %c0_93] : memref<8x2x32xf32, #tpu.memory_space<vmem>>, vector<1x2x32xf32>
    %281 = vector.shape_cast %280 : vector<1x2x32xf32> to vector<2x32xf32>
    %282 = vector.shape_cast %277 : vector<2x32xf32> to vector<1x2x32xf32>
    tpu.vector_store %arg7[%279, %c0_92, %c0_93], %282 {strides = array<i32>} : memref<8x2x32xf32, #tpu.memory_space<vmem>>, vector<1x2x32xf32>,
    %c7_i32_94 = arith.constant 7 : i32
    %283 = arith.subi %c7_i32_94, %c3_i32 : i32
    %284 = arith.index_cast %283 : i32 to index
    %c0_95 = arith.constant 0 : index
    %c0_96 = arith.constant 0 : index
    %285 = vector.load %arg2[%284, %c0_95, %c0_96] : memref<8x2x96xf32, #tpu.memory_space<vmem>>, vector<1x2x96xf32>
    %286 = vector.shape_cast %285 : vector<1x2x96xf32> to vector<2x96xf32>
    %c0_97 = arith.constant 0 : index
    %c0_98 = arith.constant 0 : index
    %287 = vector.load %arg10[%c0_97, %c0_98] : memref<2x32xf32, #tpu.memory_space<vmem>>, vector<2x32xf32>
    %288 = arith.truncf %287 : vector<2x32xf32> to vector<2x32xbf16>
    %cst_99 = arith.constant dense<0.000000e+00> : vector<2x96xf32>
    %289 = tpu.matmul %288, %4, %cst_99 {dimension_numbers = #tpu.dot_dimension_numbers<[1], [0], [0], [1], [0, 0, 1, 1], [], []>} : vector<2x32xbf16>, vector<32x96xbf16>, vector<2x96xf32> -> vector<2x96xf32>
    %290 = vector.extract_strided_slice %286 {offsets = [0, 0], sizes = [2, 32], strides = [1, 1]} : vector<2x96xf32> to vector<2x32xf32>
    %291 = vector.extract_strided_slice %289 {offsets = [0, 0], sizes = [2, 32], strides = [1, 1]} : vector<2x96xf32> to vector<2x32xf32>
    %292 = arith.addf %290, %291 : vector<2x32xf32>
    %293 = arith.negf %292 : vector<2x32xf32>
    %294 = math.exp %293 : vector<2x32xf32>
    %cst_100 = arith.constant 1.000000e+00 : f32
    %295 = vector.broadcast %cst_100 : f32 to vector<2x32xf32>
    %296 = arith.addf %295, %294 : vector<2x32xf32>
    %297 = arith.divf %295, %296 : vector<2x32xf32>
    %298 = vector.extract_strided_slice %286 {offsets = [0, 32], sizes = [2, 32], strides = [1, 1]} : vector<2x96xf32> to vector<2x32xf32>
    %299 = vector.extract_strided_slice %289 {offsets = [0, 32], sizes = [2, 32], strides = [1, 1]} : vector<2x96xf32> to vector<2x32xf32>
    %300 = arith.addf %298, %299 : vector<2x32xf32>
    %301 = arith.negf %300 : vector<2x32xf32>
    %302 = math.exp %301 : vector<2x32xf32>
    %cst_101 = arith.constant 1.000000e+00 : f32
    %303 = vector.broadcast %cst_101 : f32 to vector<2x32xf32>
    %304 = arith.addf %303, %302 : vector<2x32xf32>
    %305 = arith.divf %303, %304 : vector<2x32xf32>
    %306 = vector.extract_strided_slice %286 {offsets = [0, 64], sizes = [2, 32], strides = [1, 1]} : vector<2x96xf32> to vector<2x32xf32>
    %307 = vector.extract_strided_slice %289 {offsets = [0, 64], sizes = [2, 32], strides = [1, 1]} : vector<2x96xf32> to vector<2x32xf32>
    %308 = vector.broadcast %6 : vector<1x32xf32> to vector<2x32xf32>
    %309 = arith.addf %307, %308 : vector<2x32xf32>
    %310 = arith.mulf %297, %309 : vector<2x32xf32>
    %311 = arith.addf %306, %310 : vector<2x32xf32>
    %312 = math.tanh %311 : vector<2x32xf32>
    %cst_102 = arith.constant 1.000000e+00 : f32
    %313 = vector.broadcast %cst_102 : f32 to vector<2x32xf32>
    %314 = arith.subf %313, %305 : vector<2x32xf32>
    %315 = arith.mulf %314, %312 : vector<2x32xf32>
    %316 = arith.mulf %305, %287 : vector<2x32xf32>
    %317 = arith.addf %315, %316 : vector<2x32xf32>
    %c0_103 = arith.constant 0 : index
    %c0_104 = arith.constant 0 : index
    %318 = vector.load %arg10[%c0_103, %c0_104] : memref<2x32xf32, #tpu.memory_space<vmem>>, vector<2x32xf32>
    tpu.vector_store %arg10[%c0_103, %c0_104], %317 {strides = array<i32>} : memref<2x32xf32, #tpu.memory_space<vmem>>, vector<2x32xf32>,
    %319 = arith.index_cast %283 : i32 to index
    %c0_105 = arith.constant 0 : index
    %c0_106 = arith.constant 0 : index
    %320 = vector.load %arg8[%319, %c0_105, %c0_106] : memref<8x2x32xf32, #tpu.memory_space<vmem>>, vector<1x2x32xf32>
    %321 = vector.shape_cast %320 : vector<1x2x32xf32> to vector<2x32xf32>
    %322 = vector.shape_cast %317 : vector<2x32xf32> to vector<1x2x32xf32>
    tpu.vector_store %arg8[%319, %c0_105, %c0_106], %322 {strides = array<i32>} : memref<8x2x32xf32, #tpu.memory_space<vmem>>, vector<1x2x32xf32>,
    %c4_i32 = arith.constant 4 : i32
    %323 = arith.index_cast %c4_i32 : i32 to index
    %c0_107 = arith.constant 0 : index
    %c0_108 = arith.constant 0 : index
    %324 = vector.load %arg1[%323, %c0_107, %c0_108] : memref<8x2x96xf32, #tpu.memory_space<vmem>>, vector<1x2x96xf32>
    %325 = vector.shape_cast %324 : vector<1x2x96xf32> to vector<2x96xf32>
    %c0_109 = arith.constant 0 : index
    %c0_110 = arith.constant 0 : index
    %326 = vector.load %arg9[%c0_109, %c0_110] : memref<2x32xf32, #tpu.memory_space<vmem>>, vector<2x32xf32>
    %327 = arith.truncf %326 : vector<2x32xf32> to vector<2x32xbf16>
    %cst_111 = arith.constant dense<0.000000e+00> : vector<2x96xf32>
    %328 = tpu.matmul %327, %3, %cst_111 {dimension_numbers = #tpu.dot_dimension_numbers<[1], [0], [0], [1], [0, 0, 1, 1], [], []>} : vector<2x32xbf16>, vector<32x96xbf16>, vector<2x96xf32> -> vector<2x96xf32>
    %329 = vector.extract_strided_slice %325 {offsets = [0, 0], sizes = [2, 32], strides = [1, 1]} : vector<2x96xf32> to vector<2x32xf32>
    %330 = vector.extract_strided_slice %328 {offsets = [0, 0], sizes = [2, 32], strides = [1, 1]} : vector<2x96xf32> to vector<2x32xf32>
    %331 = arith.addf %329, %330 : vector<2x32xf32>
    %332 = arith.negf %331 : vector<2x32xf32>
    %333 = math.exp %332 : vector<2x32xf32>
    %cst_112 = arith.constant 1.000000e+00 : f32
    %334 = vector.broadcast %cst_112 : f32 to vector<2x32xf32>
    %335 = arith.addf %334, %333 : vector<2x32xf32>
    %336 = arith.divf %334, %335 : vector<2x32xf32>
    %337 = vector.extract_strided_slice %325 {offsets = [0, 32], sizes = [2, 32], strides = [1, 1]} : vector<2x96xf32> to vector<2x32xf32>
    %338 = vector.extract_strided_slice %328 {offsets = [0, 32], sizes = [2, 32], strides = [1, 1]} : vector<2x96xf32> to vector<2x32xf32>
    %339 = arith.addf %337, %338 : vector<2x32xf32>
    %340 = arith.negf %339 : vector<2x32xf32>
    %341 = math.exp %340 : vector<2x32xf32>
    %cst_113 = arith.constant 1.000000e+00 : f32
    %342 = vector.broadcast %cst_113 : f32 to vector<2x32xf32>
    %343 = arith.addf %342, %341 : vector<2x32xf32>
    %344 = arith.divf %342, %343 : vector<2x32xf32>
    %345 = vector.extract_strided_slice %325 {offsets = [0, 64], sizes = [2, 32], strides = [1, 1]} : vector<2x96xf32> to vector<2x32xf32>
    %346 = vector.extract_strided_slice %328 {offsets = [0, 64], sizes = [2, 32], strides = [1, 1]} : vector<2x96xf32> to vector<2x32xf32>
    %347 = vector.broadcast %5 : vector<1x32xf32> to vector<2x32xf32>
    %348 = arith.addf %346, %347 : vector<2x32xf32>
    %349 = arith.mulf %336, %348 : vector<2x32xf32>
    %350 = arith.addf %345, %349 : vector<2x32xf32>
    %351 = math.tanh %350 : vector<2x32xf32>
    %cst_114 = arith.constant 1.000000e+00 : f32
    %352 = vector.broadcast %cst_114 : f32 to vector<2x32xf32>
    %353 = arith.subf %352, %344 : vector<2x32xf32>
    %354 = arith.mulf %353, %351 : vector<2x32xf32>
    %355 = arith.mulf %344, %326 : vector<2x32xf32>
    %356 = arith.addf %354, %355 : vector<2x32xf32>
    %c0_115 = arith.constant 0 : index
    %c0_116 = arith.constant 0 : index
    %357 = vector.load %arg9[%c0_115, %c0_116] : memref<2x32xf32, #tpu.memory_space<vmem>>, vector<2x32xf32>
    tpu.vector_store %arg9[%c0_115, %c0_116], %356 {strides = array<i32>} : memref<2x32xf32, #tpu.memory_space<vmem>>, vector<2x32xf32>,
    %358 = arith.index_cast %c4_i32 : i32 to index
    %c0_117 = arith.constant 0 : index
    %c0_118 = arith.constant 0 : index
    %359 = vector.load %arg7[%358, %c0_117, %c0_118] : memref<8x2x32xf32, #tpu.memory_space<vmem>>, vector<1x2x32xf32>
    %360 = vector.shape_cast %359 : vector<1x2x32xf32> to vector<2x32xf32>
    %361 = vector.shape_cast %356 : vector<2x32xf32> to vector<1x2x32xf32>
    tpu.vector_store %arg7[%358, %c0_117, %c0_118], %361 {strides = array<i32>} : memref<8x2x32xf32, #tpu.memory_space<vmem>>, vector<1x2x32xf32>,
    %c7_i32_119 = arith.constant 7 : i32
    %362 = arith.subi %c7_i32_119, %c4_i32 : i32
    %363 = arith.index_cast %362 : i32 to index
    %c0_120 = arith.constant 0 : index
    %c0_121 = arith.constant 0 : index
    %364 = vector.load %arg2[%363, %c0_120, %c0_121] : memref<8x2x96xf32, #tpu.memory_space<vmem>>, vector<1x2x96xf32>
    %365 = vector.shape_cast %364 : vector<1x2x96xf32> to vector<2x96xf32>
    %c0_122 = arith.constant 0 : index
    %c0_123 = arith.constant 0 : index
    %366 = vector.load %arg10[%c0_122, %c0_123] : memref<2x32xf32, #tpu.memory_space<vmem>>, vector<2x32xf32>
    %367 = arith.truncf %366 : vector<2x32xf32> to vector<2x32xbf16>
    %cst_124 = arith.constant dense<0.000000e+00> : vector<2x96xf32>
    %368 = tpu.matmul %367, %4, %cst_124 {dimension_numbers = #tpu.dot_dimension_numbers<[1], [0], [0], [1], [0, 0, 1, 1], [], []>} : vector<2x32xbf16>, vector<32x96xbf16>, vector<2x96xf32> -> vector<2x96xf32>
    %369 = vector.extract_strided_slice %365 {offsets = [0, 0], sizes = [2, 32], strides = [1, 1]} : vector<2x96xf32> to vector<2x32xf32>
    %370 = vector.extract_strided_slice %368 {offsets = [0, 0], sizes = [2, 32], strides = [1, 1]} : vector<2x96xf32> to vector<2x32xf32>
    %371 = arith.addf %369, %370 : vector<2x32xf32>
    %372 = arith.negf %371 : vector<2x32xf32>
    %373 = math.exp %372 : vector<2x32xf32>
    %cst_125 = arith.constant 1.000000e+00 : f32
    %374 = vector.broadcast %cst_125 : f32 to vector<2x32xf32>
    %375 = arith.addf %374, %373 : vector<2x32xf32>
    %376 = arith.divf %374, %375 : vector<2x32xf32>
    %377 = vector.extract_strided_slice %365 {offsets = [0, 32], sizes = [2, 32], strides = [1, 1]} : vector<2x96xf32> to vector<2x32xf32>
    %378 = vector.extract_strided_slice %368 {offsets = [0, 32], sizes = [2, 32], strides = [1, 1]} : vector<2x96xf32> to vector<2x32xf32>
    %379 = arith.addf %377, %378 : vector<2x32xf32>
    %380 = arith.negf %379 : vector<2x32xf32>
    %381 = math.exp %380 : vector<2x32xf32>
    %cst_126 = arith.constant 1.000000e+00 : f32
    %382 = vector.broadcast %cst_126 : f32 to vector<2x32xf32>
    %383 = arith.addf %382, %381 : vector<2x32xf32>
    %384 = arith.divf %382, %383 : vector<2x32xf32>
    %385 = vector.extract_strided_slice %365 {offsets = [0, 64], sizes = [2, 32], strides = [1, 1]} : vector<2x96xf32> to vector<2x32xf32>
    %386 = vector.extract_strided_slice %368 {offsets = [0, 64], sizes = [2, 32], strides = [1, 1]} : vector<2x96xf32> to vector<2x32xf32>
    %387 = vector.broadcast %6 : vector<1x32xf32> to vector<2x32xf32>
    %388 = arith.addf %386, %387 : vector<2x32xf32>
    %389 = arith.mulf %376, %388 : vector<2x32xf32>
    %390 = arith.addf %385, %389 : vector<2x32xf32>
    %391 = math.tanh %390 : vector<2x32xf32>
    %cst_127 = arith.constant 1.000000e+00 : f32
    %392 = vector.broadcast %cst_127 : f32 to vector<2x32xf32>
    %393 = arith.subf %392, %384 : vector<2x32xf32>
    %394 = arith.mulf %393, %391 : vector<2x32xf32>
    %395 = arith.mulf %384, %366 : vector<2x32xf32>
    %396 = arith.addf %394, %395 : vector<2x32xf32>
    %c0_128 = arith.constant 0 : index
    %c0_129 = arith.constant 0 : index
    %397 = vector.load %arg10[%c0_128, %c0_129] : memref<2x32xf32, #tpu.memory_space<vmem>>, vector<2x32xf32>
    tpu.vector_store %arg10[%c0_128, %c0_129], %396 {strides = array<i32>} : memref<2x32xf32, #tpu.memory_space<vmem>>, vector<2x32xf32>,
    %398 = arith.index_cast %362 : i32 to index
    %c0_130 = arith.constant 0 : index
    %c0_131 = arith.constant 0 : index
    %399 = vector.load %arg8[%398, %c0_130, %c0_131] : memref<8x2x32xf32, #tpu.memory_space<vmem>>, vector<1x2x32xf32>
    %400 = vector.shape_cast %399 : vector<1x2x32xf32> to vector<2x32xf32>
    %401 = vector.shape_cast %396 : vector<2x32xf32> to vector<1x2x32xf32>
    tpu.vector_store %arg8[%398, %c0_130, %c0_131], %401 {strides = array<i32>} : memref<8x2x32xf32, #tpu.memory_space<vmem>>, vector<1x2x32xf32>,
    %c5_i32 = arith.constant 5 : i32
    %402 = arith.index_cast %c5_i32 : i32 to index
    %c0_132 = arith.constant 0 : index
    %c0_133 = arith.constant 0 : index
    %403 = vector.load %arg1[%402, %c0_132, %c0_133] : memref<8x2x96xf32, #tpu.memory_space<vmem>>, vector<1x2x96xf32>
    %404 = vector.shape_cast %403 : vector<1x2x96xf32> to vector<2x96xf32>
    %c0_134 = arith.constant 0 : index
    %c0_135 = arith.constant 0 : index
    %405 = vector.load %arg9[%c0_134, %c0_135] : memref<2x32xf32, #tpu.memory_space<vmem>>, vector<2x32xf32>
    %406 = arith.truncf %405 : vector<2x32xf32> to vector<2x32xbf16>
    %cst_136 = arith.constant dense<0.000000e+00> : vector<2x96xf32>
    %407 = tpu.matmul %406, %3, %cst_136 {dimension_numbers = #tpu.dot_dimension_numbers<[1], [0], [0], [1], [0, 0, 1, 1], [], []>} : vector<2x32xbf16>, vector<32x96xbf16>, vector<2x96xf32> -> vector<2x96xf32>
    %408 = vector.extract_strided_slice %404 {offsets = [0, 0], sizes = [2, 32], strides = [1, 1]} : vector<2x96xf32> to vector<2x32xf32>
    %409 = vector.extract_strided_slice %407 {offsets = [0, 0], sizes = [2, 32], strides = [1, 1]} : vector<2x96xf32> to vector<2x32xf32>
    %410 = arith.addf %408, %409 : vector<2x32xf32>
    %411 = arith.negf %410 : vector<2x32xf32>
    %412 = math.exp %411 : vector<2x32xf32>
    %cst_137 = arith.constant 1.000000e+00 : f32
    %413 = vector.broadcast %cst_137 : f32 to vector<2x32xf32>
    %414 = arith.addf %413, %412 : vector<2x32xf32>
    %415 = arith.divf %413, %414 : vector<2x32xf32>
    %416 = vector.extract_strided_slice %404 {offsets = [0, 32], sizes = [2, 32], strides = [1, 1]} : vector<2x96xf32> to vector<2x32xf32>
    %417 = vector.extract_strided_slice %407 {offsets = [0, 32], sizes = [2, 32], strides = [1, 1]} : vector<2x96xf32> to vector<2x32xf32>
    %418 = arith.addf %416, %417 : vector<2x32xf32>
    %419 = arith.negf %418 : vector<2x32xf32>
    %420 = math.exp %419 : vector<2x32xf32>
    %cst_138 = arith.constant 1.000000e+00 : f32
    %421 = vector.broadcast %cst_138 : f32 to vector<2x32xf32>
    %422 = arith.addf %421, %420 : vector<2x32xf32>
    %423 = arith.divf %421, %422 : vector<2x32xf32>
    %424 = vector.extract_strided_slice %404 {offsets = [0, 64], sizes = [2, 32], strides = [1, 1]} : vector<2x96xf32> to vector<2x32xf32>
    %425 = vector.extract_strided_slice %407 {offsets = [0, 64], sizes = [2, 32], strides = [1, 1]} : vector<2x96xf32> to vector<2x32xf32>
    %426 = vector.broadcast %5 : vector<1x32xf32> to vector<2x32xf32>
    %427 = arith.addf %425, %426 : vector<2x32xf32>
    %428 = arith.mulf %415, %427 : vector<2x32xf32>
    %429 = arith.addf %424, %428 : vector<2x32xf32>
    %430 = math.tanh %429 : vector<2x32xf32>
    %cst_139 = arith.constant 1.000000e+00 : f32
    %431 = vector.broadcast %cst_139 : f32 to vector<2x32xf32>
    %432 = arith.subf %431, %423 : vector<2x32xf32>
    %433 = arith.mulf %432, %430 : vector<2x32xf32>
    %434 = arith.mulf %423, %405 : vector<2x32xf32>
    %435 = arith.addf %433, %434 : vector<2x32xf32>
    %c0_140 = arith.constant 0 : index
    %c0_141 = arith.constant 0 : index
    %436 = vector.load %arg9[%c0_140, %c0_141] : memref<2x32xf32, #tpu.memory_space<vmem>>, vector<2x32xf32>
    tpu.vector_store %arg9[%c0_140, %c0_141], %435 {strides = array<i32>} : memref<2x32xf32, #tpu.memory_space<vmem>>, vector<2x32xf32>,
    %437 = arith.index_cast %c5_i32 : i32 to index
    %c0_142 = arith.constant 0 : index
    %c0_143 = arith.constant 0 : index
    %438 = vector.load %arg7[%437, %c0_142, %c0_143] : memref<8x2x32xf32, #tpu.memory_space<vmem>>, vector<1x2x32xf32>
    %439 = vector.shape_cast %438 : vector<1x2x32xf32> to vector<2x32xf32>
    %440 = vector.shape_cast %435 : vector<2x32xf32> to vector<1x2x32xf32>
    tpu.vector_store %arg7[%437, %c0_142, %c0_143], %440 {strides = array<i32>} : memref<8x2x32xf32, #tpu.memory_space<vmem>>, vector<1x2x32xf32>,
    %c7_i32_144 = arith.constant 7 : i32
    %441 = arith.subi %c7_i32_144, %c5_i32 : i32
    %442 = arith.index_cast %441 : i32 to index
    %c0_145 = arith.constant 0 : index
    %c0_146 = arith.constant 0 : index
    %443 = vector.load %arg2[%442, %c0_145, %c0_146] : memref<8x2x96xf32, #tpu.memory_space<vmem>>, vector<1x2x96xf32>
    %444 = vector.shape_cast %443 : vector<1x2x96xf32> to vector<2x96xf32>
    %c0_147 = arith.constant 0 : index
    %c0_148 = arith.constant 0 : index
    %445 = vector.load %arg10[%c0_147, %c0_148] : memref<2x32xf32, #tpu.memory_space<vmem>>, vector<2x32xf32>
    %446 = arith.truncf %445 : vector<2x32xf32> to vector<2x32xbf16>
    %cst_149 = arith.constant dense<0.000000e+00> : vector<2x96xf32>
    %447 = tpu.matmul %446, %4, %cst_149 {dimension_numbers = #tpu.dot_dimension_numbers<[1], [0], [0], [1], [0, 0, 1, 1], [], []>} : vector<2x32xbf16>, vector<32x96xbf16>, vector<2x96xf32> -> vector<2x96xf32>
    %448 = vector.extract_strided_slice %444 {offsets = [0, 0], sizes = [2, 32], strides = [1, 1]} : vector<2x96xf32> to vector<2x32xf32>
    %449 = vector.extract_strided_slice %447 {offsets = [0, 0], sizes = [2, 32], strides = [1, 1]} : vector<2x96xf32> to vector<2x32xf32>
    %450 = arith.addf %448, %449 : vector<2x32xf32>
    %451 = arith.negf %450 : vector<2x32xf32>
    %452 = math.exp %451 : vector<2x32xf32>
    %cst_150 = arith.constant 1.000000e+00 : f32
    %453 = vector.broadcast %cst_150 : f32 to vector<2x32xf32>
    %454 = arith.addf %453, %452 : vector<2x32xf32>
    %455 = arith.divf %453, %454 : vector<2x32xf32>
    %456 = vector.extract_strided_slice %444 {offsets = [0, 32], sizes = [2, 32], strides = [1, 1]} : vector<2x96xf32> to vector<2x32xf32>
    %457 = vector.extract_strided_slice %447 {offsets = [0, 32], sizes = [2, 32], strides = [1, 1]} : vector<2x96xf32> to vector<2x32xf32>
    %458 = arith.addf %456, %457 : vector<2x32xf32>
    %459 = arith.negf %458 : vector<2x32xf32>
    %460 = math.exp %459 : vector<2x32xf32>
    %cst_151 = arith.constant 1.000000e+00 : f32
    %461 = vector.broadcast %cst_151 : f32 to vector<2x32xf32>
    %462 = arith.addf %461, %460 : vector<2x32xf32>
    %463 = arith.divf %461, %462 : vector<2x32xf32>
    %464 = vector.extract_strided_slice %444 {offsets = [0, 64], sizes = [2, 32], strides = [1, 1]} : vector<2x96xf32> to vector<2x32xf32>
    %465 = vector.extract_strided_slice %447 {offsets = [0, 64], sizes = [2, 32], strides = [1, 1]} : vector<2x96xf32> to vector<2x32xf32>
    %466 = vector.broadcast %6 : vector<1x32xf32> to vector<2x32xf32>
    %467 = arith.addf %465, %466 : vector<2x32xf32>
    %468 = arith.mulf %455, %467 : vector<2x32xf32>
    %469 = arith.addf %464, %468 : vector<2x32xf32>
    %470 = math.tanh %469 : vector<2x32xf32>
    %cst_152 = arith.constant 1.000000e+00 : f32
    %471 = vector.broadcast %cst_152 : f32 to vector<2x32xf32>
    %472 = arith.subf %471, %463 : vector<2x32xf32>
    %473 = arith.mulf %472, %470 : vector<2x32xf32>
    %474 = arith.mulf %463, %445 : vector<2x32xf32>
    %475 = arith.addf %473, %474 : vector<2x32xf32>
    %c0_153 = arith.constant 0 : index
    %c0_154 = arith.constant 0 : index
    %476 = vector.load %arg10[%c0_153, %c0_154] : memref<2x32xf32, #tpu.memory_space<vmem>>, vector<2x32xf32>
    tpu.vector_store %arg10[%c0_153, %c0_154], %475 {strides = array<i32>} : memref<2x32xf32, #tpu.memory_space<vmem>>, vector<2x32xf32>,
    %477 = arith.index_cast %441 : i32 to index
    %c0_155 = arith.constant 0 : index
    %c0_156 = arith.constant 0 : index
    %478 = vector.load %arg8[%477, %c0_155, %c0_156] : memref<8x2x32xf32, #tpu.memory_space<vmem>>, vector<1x2x32xf32>
    %479 = vector.shape_cast %478 : vector<1x2x32xf32> to vector<2x32xf32>
    %480 = vector.shape_cast %475 : vector<2x32xf32> to vector<1x2x32xf32>
    tpu.vector_store %arg8[%477, %c0_155, %c0_156], %480 {strides = array<i32>} : memref<8x2x32xf32, #tpu.memory_space<vmem>>, vector<1x2x32xf32>,
    %c6_i32 = arith.constant 6 : i32
    %481 = arith.index_cast %c6_i32 : i32 to index
    %c0_157 = arith.constant 0 : index
    %c0_158 = arith.constant 0 : index
    %482 = vector.load %arg1[%481, %c0_157, %c0_158] : memref<8x2x96xf32, #tpu.memory_space<vmem>>, vector<1x2x96xf32>
    %483 = vector.shape_cast %482 : vector<1x2x96xf32> to vector<2x96xf32>
    %c0_159 = arith.constant 0 : index
    %c0_160 = arith.constant 0 : index
    %484 = vector.load %arg9[%c0_159, %c0_160] : memref<2x32xf32, #tpu.memory_space<vmem>>, vector<2x32xf32>
    %485 = arith.truncf %484 : vector<2x32xf32> to vector<2x32xbf16>
    %cst_161 = arith.constant dense<0.000000e+00> : vector<2x96xf32>
    %486 = tpu.matmul %485, %3, %cst_161 {dimension_numbers = #tpu.dot_dimension_numbers<[1], [0], [0], [1], [0, 0, 1, 1], [], []>} : vector<2x32xbf16>, vector<32x96xbf16>, vector<2x96xf32> -> vector<2x96xf32>
    %487 = vector.extract_strided_slice %483 {offsets = [0, 0], sizes = [2, 32], strides = [1, 1]} : vector<2x96xf32> to vector<2x32xf32>
    %488 = vector.extract_strided_slice %486 {offsets = [0, 0], sizes = [2, 32], strides = [1, 1]} : vector<2x96xf32> to vector<2x32xf32>
    %489 = arith.addf %487, %488 : vector<2x32xf32>
    %490 = arith.negf %489 : vector<2x32xf32>
    %491 = math.exp %490 : vector<2x32xf32>
    %cst_162 = arith.constant 1.000000e+00 : f32
    %492 = vector.broadcast %cst_162 : f32 to vector<2x32xf32>
    %493 = arith.addf %492, %491 : vector<2x32xf32>
    %494 = arith.divf %492, %493 : vector<2x32xf32>
    %495 = vector.extract_strided_slice %483 {offsets = [0, 32], sizes = [2, 32], strides = [1, 1]} : vector<2x96xf32> to vector<2x32xf32>
    %496 = vector.extract_strided_slice %486 {offsets = [0, 32], sizes = [2, 32], strides = [1, 1]} : vector<2x96xf32> to vector<2x32xf32>
    %497 = arith.addf %495, %496 : vector<2x32xf32>
    %498 = arith.negf %497 : vector<2x32xf32>
    %499 = math.exp %498 : vector<2x32xf32>
    %cst_163 = arith.constant 1.000000e+00 : f32
    %500 = vector.broadcast %cst_163 : f32 to vector<2x32xf32>
    %501 = arith.addf %500, %499 : vector<2x32xf32>
    %502 = arith.divf %500, %501 : vector<2x32xf32>
    %503 = vector.extract_strided_slice %483 {offsets = [0, 64], sizes = [2, 32], strides = [1, 1]} : vector<2x96xf32> to vector<2x32xf32>
    %504 = vector.extract_strided_slice %486 {offsets = [0, 64], sizes = [2, 32], strides = [1, 1]} : vector<2x96xf32> to vector<2x32xf32>
    %505 = vector.broadcast %5 : vector<1x32xf32> to vector<2x32xf32>
    %506 = arith.addf %504, %505 : vector<2x32xf32>
    %507 = arith.mulf %494, %506 : vector<2x32xf32>
    %508 = arith.addf %503, %507 : vector<2x32xf32>
    %509 = math.tanh %508 : vector<2x32xf32>
    %cst_164 = arith.constant 1.000000e+00 : f32
    %510 = vector.broadcast %cst_164 : f32 to vector<2x32xf32>
    %511 = arith.subf %510, %502 : vector<2x32xf32>
    %512 = arith.mulf %511, %509 : vector<2x32xf32>
    %513 = arith.mulf %502, %484 : vector<2x32xf32>
    %514 = arith.addf %512, %513 : vector<2x32xf32>
    %c0_165 = arith.constant 0 : index
    %c0_166 = arith.constant 0 : index
    %515 = vector.load %arg9[%c0_165, %c0_166] : memref<2x32xf32, #tpu.memory_space<vmem>>, vector<2x32xf32>
    tpu.vector_store %arg9[%c0_165, %c0_166], %514 {strides = array<i32>} : memref<2x32xf32, #tpu.memory_space<vmem>>, vector<2x32xf32>,
    %516 = arith.index_cast %c6_i32 : i32 to index
    %c0_167 = arith.constant 0 : index
    %c0_168 = arith.constant 0 : index
    %517 = vector.load %arg7[%516, %c0_167, %c0_168] : memref<8x2x32xf32, #tpu.memory_space<vmem>>, vector<1x2x32xf32>
    %518 = vector.shape_cast %517 : vector<1x2x32xf32> to vector<2x32xf32>
    %519 = vector.shape_cast %514 : vector<2x32xf32> to vector<1x2x32xf32>
    tpu.vector_store %arg7[%516, %c0_167, %c0_168], %519 {strides = array<i32>} : memref<8x2x32xf32, #tpu.memory_space<vmem>>, vector<1x2x32xf32>,
    %c7_i32_169 = arith.constant 7 : i32
    %520 = arith.subi %c7_i32_169, %c6_i32 : i32
    %521 = arith.index_cast %520 : i32 to index
    %c0_170 = arith.constant 0 : index
    %c0_171 = arith.constant 0 : index
    %522 = vector.load %arg2[%521, %c0_170, %c0_171] : memref<8x2x96xf32, #tpu.memory_space<vmem>>, vector<1x2x96xf32>
    %523 = vector.shape_cast %522 : vector<1x2x96xf32> to vector<2x96xf32>
    %c0_172 = arith.constant 0 : index
    %c0_173 = arith.constant 0 : index
    %524 = vector.load %arg10[%c0_172, %c0_173] : memref<2x32xf32, #tpu.memory_space<vmem>>, vector<2x32xf32>
    %525 = arith.truncf %524 : vector<2x32xf32> to vector<2x32xbf16>
    %cst_174 = arith.constant dense<0.000000e+00> : vector<2x96xf32>
    %526 = tpu.matmul %525, %4, %cst_174 {dimension_numbers = #tpu.dot_dimension_numbers<[1], [0], [0], [1], [0, 0, 1, 1], [], []>} : vector<2x32xbf16>, vector<32x96xbf16>, vector<2x96xf32> -> vector<2x96xf32>
    %527 = vector.extract_strided_slice %523 {offsets = [0, 0], sizes = [2, 32], strides = [1, 1]} : vector<2x96xf32> to vector<2x32xf32>
    %528 = vector.extract_strided_slice %526 {offsets = [0, 0], sizes = [2, 32], strides = [1, 1]} : vector<2x96xf32> to vector<2x32xf32>
    %529 = arith.addf %527, %528 : vector<2x32xf32>
    %530 = arith.negf %529 : vector<2x32xf32>
    %531 = math.exp %530 : vector<2x32xf32>
    %cst_175 = arith.constant 1.000000e+00 : f32
    %532 = vector.broadcast %cst_175 : f32 to vector<2x32xf32>
    %533 = arith.addf %532, %531 : vector<2x32xf32>
    %534 = arith.divf %532, %533 : vector<2x32xf32>
    %535 = vector.extract_strided_slice %523 {offsets = [0, 32], sizes = [2, 32], strides = [1, 1]} : vector<2x96xf32> to vector<2x32xf32>
    %536 = vector.extract_strided_slice %526 {offsets = [0, 32], sizes = [2, 32], strides = [1, 1]} : vector<2x96xf32> to vector<2x32xf32>
    %537 = arith.addf %535, %536 : vector<2x32xf32>
    %538 = arith.negf %537 : vector<2x32xf32>
    %539 = math.exp %538 : vector<2x32xf32>
    %cst_176 = arith.constant 1.000000e+00 : f32
    %540 = vector.broadcast %cst_176 : f32 to vector<2x32xf32>
    %541 = arith.addf %540, %539 : vector<2x32xf32>
    %542 = arith.divf %540, %541 : vector<2x32xf32>
    %543 = vector.extract_strided_slice %523 {offsets = [0, 64], sizes = [2, 32], strides = [1, 1]} : vector<2x96xf32> to vector<2x32xf32>
    %544 = vector.extract_strided_slice %526 {offsets = [0, 64], sizes = [2, 32], strides = [1, 1]} : vector<2x96xf32> to vector<2x32xf32>
    %545 = vector.broadcast %6 : vector<1x32xf32> to vector<2x32xf32>
    %546 = arith.addf %544, %545 : vector<2x32xf32>
    %547 = arith.mulf %534, %546 : vector<2x32xf32>
    %548 = arith.addf %543, %547 : vector<2x32xf32>
    %549 = math.tanh %548 : vector<2x32xf32>
    %cst_177 = arith.constant 1.000000e+00 : f32
    %550 = vector.broadcast %cst_177 : f32 to vector<2x32xf32>
    %551 = arith.subf %550, %542 : vector<2x32xf32>
    %552 = arith.mulf %551, %549 : vector<2x32xf32>
    %553 = arith.mulf %542, %524 : vector<2x32xf32>
    %554 = arith.addf %552, %553 : vector<2x32xf32>
    %c0_178 = arith.constant 0 : index
    %c0_179 = arith.constant 0 : index
    %555 = vector.load %arg10[%c0_178, %c0_179] : memref<2x32xf32, #tpu.memory_space<vmem>>, vector<2x32xf32>
    tpu.vector_store %arg10[%c0_178, %c0_179], %554 {strides = array<i32>} : memref<2x32xf32, #tpu.memory_space<vmem>>, vector<2x32xf32>,
    %556 = arith.index_cast %520 : i32 to index
    %c0_180 = arith.constant 0 : index
    %c0_181 = arith.constant 0 : index
    %557 = vector.load %arg8[%556, %c0_180, %c0_181] : memref<8x2x32xf32, #tpu.memory_space<vmem>>, vector<1x2x32xf32>
    %558 = vector.shape_cast %557 : vector<1x2x32xf32> to vector<2x32xf32>
    %559 = vector.shape_cast %554 : vector<2x32xf32> to vector<1x2x32xf32>
    tpu.vector_store %arg8[%556, %c0_180, %c0_181], %559 {strides = array<i32>} : memref<8x2x32xf32, #tpu.memory_space<vmem>>, vector<1x2x32xf32>,
    %c7_i32_182 = arith.constant 7 : i32
    %560 = arith.index_cast %c7_i32_182 : i32 to index
    %c0_183 = arith.constant 0 : index
    %c0_184 = arith.constant 0 : index
    %561 = vector.load %arg1[%560, %c0_183, %c0_184] : memref<8x2x96xf32, #tpu.memory_space<vmem>>, vector<1x2x96xf32>
    %562 = vector.shape_cast %561 : vector<1x2x96xf32> to vector<2x96xf32>
    %c0_185 = arith.constant 0 : index
    %c0_186 = arith.constant 0 : index
    %563 = vector.load %arg9[%c0_185, %c0_186] : memref<2x32xf32, #tpu.memory_space<vmem>>, vector<2x32xf32>
    %564 = arith.truncf %563 : vector<2x32xf32> to vector<2x32xbf16>
    %cst_187 = arith.constant dense<0.000000e+00> : vector<2x96xf32>
    %565 = tpu.matmul %564, %3, %cst_187 {dimension_numbers = #tpu.dot_dimension_numbers<[1], [0], [0], [1], [0, 0, 1, 1], [], []>} : vector<2x32xbf16>, vector<32x96xbf16>, vector<2x96xf32> -> vector<2x96xf32>
    %566 = vector.extract_strided_slice %562 {offsets = [0, 0], sizes = [2, 32], strides = [1, 1]} : vector<2x96xf32> to vector<2x32xf32>
    %567 = vector.extract_strided_slice %565 {offsets = [0, 0], sizes = [2, 32], strides = [1, 1]} : vector<2x96xf32> to vector<2x32xf32>
    %568 = arith.addf %566, %567 : vector<2x32xf32>
    %569 = arith.negf %568 : vector<2x32xf32>
    %570 = math.exp %569 : vector<2x32xf32>
    %cst_188 = arith.constant 1.000000e+00 : f32
    %571 = vector.broadcast %cst_188 : f32 to vector<2x32xf32>
    %572 = arith.addf %571, %570 : vector<2x32xf32>
    %573 = arith.divf %571, %572 : vector<2x32xf32>
    %574 = vector.extract_strided_slice %562 {offsets = [0, 32], sizes = [2, 32], strides = [1, 1]} : vector<2x96xf32> to vector<2x32xf32>
    %575 = vector.extract_strided_slice %565 {offsets = [0, 32], sizes = [2, 32], strides = [1, 1]} : vector<2x96xf32> to vector<2x32xf32>
    %576 = arith.addf %574, %575 : vector<2x32xf32>
    %577 = arith.negf %576 : vector<2x32xf32>
    %578 = math.exp %577 : vector<2x32xf32>
    %cst_189 = arith.constant 1.000000e+00 : f32
    %579 = vector.broadcast %cst_189 : f32 to vector<2x32xf32>
    %580 = arith.addf %579, %578 : vector<2x32xf32>
    %581 = arith.divf %579, %580 : vector<2x32xf32>
    %582 = vector.extract_strided_slice %562 {offsets = [0, 64], sizes = [2, 32], strides = [1, 1]} : vector<2x96xf32> to vector<2x32xf32>
    %583 = vector.extract_strided_slice %565 {offsets = [0, 64], sizes = [2, 32], strides = [1, 1]} : vector<2x96xf32> to vector<2x32xf32>
    %584 = vector.broadcast %5 : vector<1x32xf32> to vector<2x32xf32>
    %585 = arith.addf %583, %584 : vector<2x32xf32>
    %586 = arith.mulf %573, %585 : vector<2x32xf32>
    %587 = arith.addf %582, %586 : vector<2x32xf32>
    %588 = math.tanh %587 : vector<2x32xf32>
    %cst_190 = arith.constant 1.000000e+00 : f32
    %589 = vector.broadcast %cst_190 : f32 to vector<2x32xf32>
    %590 = arith.subf %589, %581 : vector<2x32xf32>
    %591 = arith.mulf %590, %588 : vector<2x32xf32>
    %592 = arith.mulf %581, %563 : vector<2x32xf32>
    %593 = arith.addf %591, %592 : vector<2x32xf32>
    %c0_191 = arith.constant 0 : index
    %c0_192 = arith.constant 0 : index
    %594 = vector.load %arg9[%c0_191, %c0_192] : memref<2x32xf32, #tpu.memory_space<vmem>>, vector<2x32xf32>
    tpu.vector_store %arg9[%c0_191, %c0_192], %593 {strides = array<i32>} : memref<2x32xf32, #tpu.memory_space<vmem>>, vector<2x32xf32>,
    %595 = arith.index_cast %c7_i32_182 : i32 to index
    %c0_193 = arith.constant 0 : index
    %c0_194 = arith.constant 0 : index
    %596 = vector.load %arg7[%595, %c0_193, %c0_194] : memref<8x2x32xf32, #tpu.memory_space<vmem>>, vector<1x2x32xf32>
    %597 = vector.shape_cast %596 : vector<1x2x32xf32> to vector<2x32xf32>
    %598 = vector.shape_cast %593 : vector<2x32xf32> to vector<1x2x32xf32>
    tpu.vector_store %arg7[%595, %c0_193, %c0_194], %598 {strides = array<i32>} : memref<8x2x32xf32, #tpu.memory_space<vmem>>, vector<1x2x32xf32>,
    %c7_i32_195 = arith.constant 7 : i32
    %599 = arith.subi %c7_i32_195, %c7_i32_182 : i32
    %600 = arith.index_cast %599 : i32 to index
    %c0_196 = arith.constant 0 : index
    %c0_197 = arith.constant 0 : index
    %601 = vector.load %arg2[%600, %c0_196, %c0_197] : memref<8x2x96xf32, #tpu.memory_space<vmem>>, vector<1x2x96xf32>
    %602 = vector.shape_cast %601 : vector<1x2x96xf32> to vector<2x96xf32>
    %c0_198 = arith.constant 0 : index
    %c0_199 = arith.constant 0 : index
    %603 = vector.load %arg10[%c0_198, %c0_199] : memref<2x32xf32, #tpu.memory_space<vmem>>, vector<2x32xf32>
    %604 = arith.truncf %603 : vector<2x32xf32> to vector<2x32xbf16>
    %cst_200 = arith.constant dense<0.000000e+00> : vector<2x96xf32>
    %605 = tpu.matmul %604, %4, %cst_200 {dimension_numbers = #tpu.dot_dimension_numbers<[1], [0], [0], [1], [0, 0, 1, 1], [], []>} : vector<2x32xbf16>, vector<32x96xbf16>, vector<2x96xf32> -> vector<2x96xf32>
    %606 = vector.extract_strided_slice %602 {offsets = [0, 0], sizes = [2, 32], strides = [1, 1]} : vector<2x96xf32> to vector<2x32xf32>
    %607 = vector.extract_strided_slice %605 {offsets = [0, 0], sizes = [2, 32], strides = [1, 1]} : vector<2x96xf32> to vector<2x32xf32>
    %608 = arith.addf %606, %607 : vector<2x32xf32>
    %609 = arith.negf %608 : vector<2x32xf32>
    %610 = math.exp %609 : vector<2x32xf32>
    %cst_201 = arith.constant 1.000000e+00 : f32
    %611 = vector.broadcast %cst_201 : f32 to vector<2x32xf32>
    %612 = arith.addf %611, %610 : vector<2x32xf32>
    %613 = arith.divf %611, %612 : vector<2x32xf32>
    %614 = vector.extract_strided_slice %602 {offsets = [0, 32], sizes = [2, 32], strides = [1, 1]} : vector<2x96xf32> to vector<2x32xf32>
    %615 = vector.extract_strided_slice %605 {offsets = [0, 32], sizes = [2, 32], strides = [1, 1]} : vector<2x96xf32> to vector<2x32xf32>
    %616 = arith.addf %614, %615 : vector<2x32xf32>
    %617 = arith.negf %616 : vector<2x32xf32>
    %618 = math.exp %617 : vector<2x32xf32>
    %cst_202 = arith.constant 1.000000e+00 : f32
    %619 = vector.broadcast %cst_202 : f32 to vector<2x32xf32>
    %620 = arith.addf %619, %618 : vector<2x32xf32>
    %621 = arith.divf %619, %620 : vector<2x32xf32>
    %622 = vector.extract_strided_slice %602 {offsets = [0, 64], sizes = [2, 32], strides = [1, 1]} : vector<2x96xf32> to vector<2x32xf32>
    %623 = vector.extract_strided_slice %605 {offsets = [0, 64], sizes = [2, 32], strides = [1, 1]} : vector<2x96xf32> to vector<2x32xf32>
    %624 = vector.broadcast %6 : vector<1x32xf32> to vector<2x32xf32>
    %625 = arith.addf %623, %624 : vector<2x32xf32>
    %626 = arith.mulf %613, %625 : vector<2x32xf32>
    %627 = arith.addf %622, %626 : vector<2x32xf32>
    %628 = math.tanh %627 : vector<2x32xf32>
    %cst_203 = arith.constant 1.000000e+00 : f32
    %629 = vector.broadcast %cst_203 : f32 to vector<2x32xf32>
    %630 = arith.subf %629, %621 : vector<2x32xf32>
    %631 = arith.mulf %630, %628 : vector<2x32xf32>
    %632 = arith.mulf %621, %603 : vector<2x32xf32>
    %633 = arith.addf %631, %632 : vector<2x32xf32>
    %c0_204 = arith.constant 0 : index
    %c0_205 = arith.constant 0 : index
    %634 = vector.load %arg10[%c0_204, %c0_205] : memref<2x32xf32, #tpu.memory_space<vmem>>, vector<2x32xf32>
    tpu.vector_store %arg10[%c0_204, %c0_205], %633 {strides = array<i32>} : memref<2x32xf32, #tpu.memory_space<vmem>>, vector<2x32xf32>,
    %635 = arith.index_cast %599 : i32 to index
    %c0_206 = arith.constant 0 : index
    %c0_207 = arith.constant 0 : index
    %636 = vector.load %arg8[%635, %c0_206, %c0_207] : memref<8x2x32xf32, #tpu.memory_space<vmem>>, vector<1x2x32xf32>
    %637 = vector.shape_cast %636 : vector<1x2x32xf32> to vector<2x32xf32>
    %638 = vector.shape_cast %633 : vector<2x32xf32> to vector<1x2x32xf32>
    tpu.vector_store %arg8[%635, %c0_206, %c0_207], %638 {strides = array<i32>} : memref<8x2x32xf32, #tpu.memory_space<vmem>>, vector<1x2x32xf32>,
    %c8_i32 = arith.constant 8 : i32
    return
  }
  func.func @transform_0(%arg0: i32) -> (i32, i32, i32) {
    %c0_i32 = arith.constant 0 : i32
    %c0_i32_0 = arith.constant 0 : i32
    %c0_i32_1 = arith.constant 0 : i32
    return %arg0, %c0_i32, %c0_i32_0 : i32, i32, i32
  }
  func.func @transform_1(%arg0: i32) -> (i32, i32, i32) {
    %c0_i32 = arith.constant 0 : i32
    %0 = arith.subi %c0_i32, %arg0 : i32
    %c0_i32_0 = arith.constant 0 : i32
    %c0_i32_1 = arith.constant 0 : i32
    %c0_i32_2 = arith.constant 0 : i32
    return %0, %c0_i32_0, %c0_i32_1 : i32, i32, i32
  }
  func.func @transform_2(%arg0: i32) -> (i32, i32) {
    %c0_i32 = arith.constant 0 : i32
    %c0_i32_0 = arith.constant 0 : i32
    %c0_i32_1 = arith.constant 0 : i32
    return %c0_i32, %c0_i32_0 : i32, i32
  }
  func.func @transform_3(%arg0: i32) -> (i32, i32) {
    %c0_i32 = arith.constant 0 : i32
    %c0_i32_0 = arith.constant 0 : i32
    %c0_i32_1 = arith.constant 0 : i32
    return %c0_i32, %c0_i32_0 : i32, i32
  }
  func.func @transform_4(%arg0: i32) -> (i32, i32) {
    %c0_i32 = arith.constant 0 : i32
    %c0_i32_0 = arith.constant 0 : i32
    %c0_i32_1 = arith.constant 0 : i32
    return %c0_i32, %c0_i32_0 : i32, i32
  }
  func.func @transform_5(%arg0: i32) -> (i32, i32) {
    %c0_i32 = arith.constant 0 : i32
    %c0_i32_0 = arith.constant 0 : i32
    %c0_i32_1 = arith.constant 0 : i32
    return %c0_i32, %c0_i32_0 : i32, i32
  }
  func.func @transform_6(%arg0: i32) -> (i32, i32, i32) {
    %c0_i32 = arith.constant 0 : i32
    %c0_i32_0 = arith.constant 0 : i32
    %c0_i32_1 = arith.constant 0 : i32
    return %arg0, %c0_i32, %c0_i32_0 : i32, i32, i32
  }
  func.func @transform_7(%arg0: i32) -> (i32, i32, i32) {
    %c0_i32 = arith.constant 0 : i32
    %0 = arith.subi %c0_i32, %arg0 : i32
    %c0_i32_0 = arith.constant 0 : i32
    %c0_i32_1 = arith.constant 0 : i32
    %c0_i32_2 = arith.constant 0 : i32
    return %0, %c0_i32_0, %c0_i32_1 : i32, i32, i32
  }
}

</mosaic_0001>

<bundles_post_ra>
// kernel: gru_cond_forward.2
= control target key start
LH: loop header
LB: loop body
LE: loop exit
PB: predicated region body
PF: predicated region fallthrough
CT: control target
= control target key end

     0   :  { %vm66_vm0 = vcmask 254976   ;;  %v1465_v1 = vmov 0.0   ;;  %vm94_vm1 = vcmask 261120   ;;  %s1468_s15 = smov 96   ;;  %s1865_s2 = inlined_call_operand.vmem [shape: bf16[32,96], index: 2, kind: input, shape index: {}]   ;;  %s1866_s3 = inlined_call_operand.vmem [shape: bf16[32,96], index: 3, kind: input, shape index: {}]   ;;  %s1867_s4 = inlined_call_operand.vmem [shape: f32[1,32], index: 4, kind: input, shape index: {}]   ;;  %s1868_s5 = inlined_call_operand.vmem [shape: f32[1,32], index: 5, kind: input, shape index: {}]   ;;  %s1869_s0 = inlined_call_operand.vmem [shape: f32[8,2,96], index: 0, kind: input, shape index: {}]   ;;  %s1870_s1 = inlined_call_operand.vmem [shape: f32[8,2,96], index: 1, kind: input, shape index: {}]   ;;  %s1871_s7 = inlined_call_operand.vmem [shape: f32[8,2,32], index: 7, kind: output, shape index: {1}]   ;;  %s1872_s6 = inlined_call_operand.vmem [shape: f32[8,2,32], index: 6, kind: output, shape index: {0}]  }
   0x1   :  { %v1512_v0 = vld [vmem:[%s1865_s2 + $0x8] sm:$0xff]  ;;  %67 = vst.msk [vmem:[#allocation2] sm:$0x3] %vm66_vm0, %v1465_v1  ;;  %v1523_v3 = vld [vmem:[%s1865_s2] sm:$0xff]  ;;  %s1466_s2 = smov 64  }
   0x2   :  { %v1518_v2 = vld [vmem:[%s1866_s3 + $0x8] sm:$0xff]  ;;  %68 = vst.msk [vmem:[#allocation3] sm:$0x3] %vm66_vm0, %v1465_v1  ;;  %104 = vmatpush.bf16.msra.mxu0 %v1512_v0  ;;  %v1531_v4 = vld [vmem:[%s1866_s3] sm:$0xff]  ;;  %268 = vmatpush.bf16.msra.mxu2 %v1512_v0 }
   0x3   :  { %192 = vmatpush.bf16.msra.mxu1 %v1518_v2  ;;  %v1367_v5 = vld [vmem:[%s1867_s4] ss:$0 sm:$0xff]  ;;  %339 = vmatpush.bf16.msra.mxu3 %v1518_v2  ;;  %v1293_v22 = vld [vmem:[%s1870_s1 + $0xe] sm:$0x3] }
   0x4   :  { %133 = vrot.lane.b32.xlu0 %v1367_v5, %s1466_s2  ;;  %v1368_v9 = vld [vmem:[%s1868_s5] ss:$0 sm:$0xff]  ;;  %s1467_s5 = smov 32  }
   0x5   :  { %v79_v19 = vld [vmem:[%s1869_s0] sm:$0x3] }
   0x6   :  { %105 = vmatpush.bf16.msra.mxu0 %v1523_v3  ;;  %269 = vmatpush.bf16.msra.mxu2 %v1523_v3 }
   0x7   :  { %193 = vmatpush.bf16.msra.mxu1 %v1531_v4  ;;  %340 = vmatpush.bf16.msra.mxu3 %v1531_v4 }
   0x8   :  { %v80_v6 = vld [vmem:[#allocation2] sm:$0x3] }
   0x9   :  { %v81_v7 = vpack.c.bf16 %v80_v6, %v80_v6  ;;  %v1543_v8 = vld [vmem:[#allocation3] sm:$0x3] }
   0xa   :  { %410 = vmatpush.bf16.msrb.mxu0 %v1512_v0  ;;  %v170_v10 = vpack.c.bf16 %v1543_v8, %v1543_v8  ;;  %552 = vmatpush.bf16.msrb.mxu2 %v1512_v0 }
   0xb   :  { %481 = vmatpush.bf16.msrb.mxu1 %v1518_v2  ;;  %623 = vmatpush.bf16.msrb.mxu3 %v1518_v2 }
   0xc   :  { %1291 = vmatmul.msk.bf16.vlgmr.msra.gmra.mxu0 %vm94_vm1, %v81_v7  ;;  %1302 = vmatmul.msk.bf16.vlgmr.msra.gmra.mxu1 %vm94_vm1, %v170_v10 }
   0xd   :  { %221 = vrot.lane.b32.xlu0 %v1368_v9, %s1466_s2 }
   0xe   :  { %411 = vmatpush.bf16.msrb.mxu0 %v1523_v3  ;;  %553 = vmatpush.bf16.msrb.mxu2 %v1523_v3 }
   0xf   :  { %482 = vmatpush.bf16.msrb.mxu1 %v1531_v4  ;;  %624 = vmatpush.bf16.msrb.mxu3 %v1531_v4 }
  0x12   :  { %694 = vmatpush.bf16.msra.mxu0 %v1512_v0 }
  0x13   :  { %765 = vmatpush.bf16.msra.mxu1 %v1518_v2 }
  0x16   :  { %695 = vmatpush.bf16.msra.mxu0 %v1523_v3 }
  0x17   :  { %766 = vmatpush.bf16.msra.mxu1 %v1531_v4 }
  0x76   :  { %v1565_v11 = vpop.permute.xlu0 %133 }
  0x7f   :  { %v1569_v15 = vpop.permute.xlu0 %221 }
  0x89   :  { %v107_v12 = vpop.f32.mrf.mxu0  ;;  %v195_v14 = vpop.f32.mrf.mxu1 }
  0x8a   :  { %v136_v13 = vadd.f32 %v1565_v11, %v107_v12  ;;  %v224_v16 = vadd.f32 %v1569_v15, %v195_v14  ;;  %v111_v20 = vadd.f32 %v107_v12, %v79_v19  ;;  %v199_v23 = vadd.f32 %v1293_v22, %v195_v14 }
  0x8c   :  { %138 = vrot.lane.b32.xlu1 %v136_v13, %s1466_s2  ;;  %v1292_v21 = vmul.f32 -1.442695, %v111_v20  ;;  %v1303_v24 = vmul.f32 -1.442695, %v199_v23 }
  0x8e   :  { %1369 = vpow2.f32 %v1292_v21 }
  0x8f   :  { %1371 = vpow2.f32 %v1303_v24 }
  0x91   :  { %v109_v17 = vpop.f32.mrf.mxu0  ;;  %v197_v18 = vpop.f32.mrf.mxu1 }
  0x94   :  { %226 = vrot.lane.b32.xlu1 %v224_v16, %s1466_s2  ;;  %v1370_v25 = vpop.eup %1369 }
  0x95   :  { %v115_v26 = vadd.f32 1.0, %v1370_v25  ;;  %v1372_v27 = vpop.eup %1371  ;;  %v1309_v25 = vld [vmem:[%s1870_s1 + $0xc] sm:$0x3] }
  0x96   :  { %v203_v28 = vadd.f32 1.0, %v1372_v27 }
  0x97   :  { %1373 = vrcp.f32 %v115_v26  ;;  %v127_v37 = vand.u32 2147483648, %v115_v26  ;;  %vm121_vm3 = vweird.f32 %v115_v26  ;;  %v125_v38 = vand.u32 2147483647, %v115_v26 }
  0x98   :  { %1375 = vrcp.f32 %v203_v28  ;;  %vm209_vm6 = vweird.f32 %v203_v28  ;;  %v215_v44 = vand.u32 2147483648, %v203_v28  ;;  %v213_v47 = vand.u32 2147483647, %v203_v28 }
  0x99   :  { %v128_v41 = vor.u32 1.1754944e-38, %v127_v37  ;;  %vm126_vm5 = vcmp.eq.f32.partialorder %v125_v38, 8.507059e+37 }
  0x9a   :  { %v216_v48 = vor.u32 1.1754944e-38, %v215_v44  ;;  %vm214_vm9 = vcmp.eq.f32.partialorder %v213_v47, 8.507059e+37 }
  0x9c   :  { %155 = vrot.lane.b32.xlu1 %v80_v6, %s1467_s5 }
  0x9d   :  { %v1374_v29 = vpop.eup %1373 }
  0x9e   :  { %v117_v30 = vmul.f32 %v1374_v29, %v115_v26  ;;  %v1376_v32 = vpop.eup %1375  ;;  %vm122_vm2 = vweird.f32 %v1374_v29 }
  0x9f   :  { %v205_v34 = vmul.f32 %v1376_v32, %v203_v28  ;;  %vm123_vm4 = vmor %vm121_vm3, %vm122_vm2  ;;  %vm210_vm7 = vweird.f32 %v1376_v32  ;;  %v1305_v28 = vld [vmem:[%s1869_s0 + $0x2] sm:$0x3] }
  0xa0   :  { %v118_v31 = vsub.f32 1.0, %v117_v30  ;;  %vm211_vm8 = vmor %vm209_vm6, %vm210_vm7 }
  0xa1   :  { %v206_v36 = vsub.f32 1.0, %v205_v34 }
  0xa2   :  { %v119_v33 = vmul.f32 %v1374_v29, %v118_v31 }
  0xa3   :  { %v207_v40 = vmul.f32 %v1376_v32, %v206_v36 }
  0xa4   :  { %v120_v35 = vadd.f32 %v1374_v29, %v119_v33 }
  0xa5   :  { %v208_v46 = vadd.f32 %v1376_v32, %v207_v40 }
  0xa6   :  { %v124_v39 = vsel %vm123_vm4, %v1374_v29, %v120_v35 }
  0xa7   :  { %v129_v43 = vsel %vm126_vm5, %v128_v41, %v124_v39  ;;  %v212_v49 = vsel %vm211_vm8, %v1376_v32, %v208_v46 }
  0xa8   :  { %v217_v51 = vsel %vm214_vm9, %v216_v48, %v212_v49  ;;  %v148_v60 = vsub.f32 1.0, %v129_v43 }
  0xa9   :  { %v236_v6 = vsub.f32 1.0, %v217_v51 }
  0xfe   :  { %v139_v42 = vpop.permute.xlu1 %138 }
  0xff   :  { %v141_v45 = vmul.f32 %v139_v42, %v129_v43 }
 0x101   :  { %143 = vrot.lane.b32.xlu2 %v141_v45, %s1466_s2 }
 0x106   :  { %v227_v50 = vpop.permute.xlu1 %226 }
 0x107   :  { %v229_v52 = vmul.f32 %v227_v50, %v217_v51 }
 0x109   :  { %231 = vrot.lane.b32.xlu2 %v229_v52, %s1466_s2 }
 0x10e   :  { %v156_v59 = vpop.permute.xlu1 %155 }
 0x10f   :  { %v158_v62 = vmul.f32 %v156_v59, %v129_v43 }
 0x15b   :  { %v144_v53 = vpop.permute.xlu2 %143 }
 0x15c   :  { %v146_v54 = vadd.f32 %v144_v53, %v79_v19 }
 0x15e   :  { %1377 = vtanh.f32 %v146_v54 }
 0x163   :  { %v232_v55 = vpop.permute.xlu2 %231 }
 0x164   :  { %v1378_v56 = vpop.eup %1377  ;;  %v234_v57 = vadd.f32 %v1293_v22, %v232_v55 }
 0x165   :  { %150 = vrot.lane.b32.xlu0 %v1378_v56, %s1468_s15 }
 0x166   :  { %1379 = vtanh.f32 %v234_v57 }
 0x16c   :  { %v1380_v58 = vpop.eup %1379 }
 0x16d   :  { %243 = vrot.lane.b32.xlu0 %v1543_v8, %s1467_s5  ;;  %238 = vrot.lane.b32.xlu2 %v1380_v58, %s1468_s15 }
 0x1c7   :  { %v239_v5 = vpop.permute.xlu2 %238 }
 0x1c8   :  { %v241_v9 = vmul.f32 %v239_v5, %v236_v6 }
 0x1d7   :  { %v151_v61 = vpop.permute.xlu0 %150 }
 0x1d8   :  { %v153_v63 = vmul.f32 %v151_v61, %v148_v60 }
 0x1da   :  { %v159_v1 = vadd.f32 %v158_v62, %v153_v63 }
 0x1dc   :  { %161 = vrot.lane.b32.xlu1 %v159_v1, %s1468_s15 }
 0x1df   :  { %v244_v7 = vpop.permute.xlu0 %243 }
 0x1e0   :  { %v246_v10 = vmul.f32 %v244_v7, %v217_v51 }
 0x1e2   :  { %v247_v12 = vadd.f32 %v246_v10, %v241_v9 }
 0x1e4   :  { %249 = vrot.lane.b32.xlu2 %v247_v12, %s1468_s15 }
 0x23e   :  { %v250_v13 = vpop.permute.xlu2 %249 }
 0x23f   :  { %252 = vst.msk [vmem:[#allocation3] sm:$0x3] %vm66_vm0, %v250_v13 }
 0x240   :  { %1304 = vst.msk [vmem:[%s1871_s7 + $0xe] sm:$0x3] %vm66_vm0, %v250_v13 }
 0x246   :  { %v1593_v8 = vld [vmem:[#allocation3] sm:$0x3] }
 0x247   :  { %v329_v14 = vpack.c.bf16 %v1593_v8, %v1593_v8 }
 0x249   :  { %1310 = vmatmul.msk.bf16.vlgmr.msra.gmra.mxu3 %vm94_vm1, %v329_v14 }
 0x24a   :  { %907 = vmatpush.bf16.msra.mxu3 %v1518_v2 }
 0x24e   :  { %v162_v16 = vpop.permute.xlu1 %161  ;;  %908 = vmatpush.bf16.msra.mxu3 %v1531_v4 }
 0x24f   :  { %165 = vst.msk [vmem:[#allocation2] sm:$0x3] %vm66_vm0, %v162_v16 }
 0x250   :  { %166 = vst.msk [vmem:[%s1872_s6] sm:$0x3] %vm66_vm0, %v162_v16 }
 0x256   :  { %v257_v17 = vld [vmem:[#allocation2] sm:$0x3] }
 0x257   :  { %v258_v18 = vpack.c.bf16 %v257_v17, %v257_v17 }
 0x259   :  { %1306 = vmatmul.msk.bf16.vlgmr.msra.gmra.mxu2 %vm94_vm1, %v258_v18 }
 0x25a   :  { %836 = vmatpush.bf16.msra.mxu2 %v1512_v0 }
 0x25e   :  { %837 = vmatpush.bf16.msra.mxu2 %v1523_v3 }
 0x2cc   :  { %v342_v19 = vpop.f32.mrf.mxu3 }
 0x2cd   :  { %v366_v20 = vadd.f32 %v342_v19, %v1569_v15  ;;  %v346_v26 = vadd.f32 %v1309_v25, %v342_v19 }
 0x2cf   :  { %368 = vrot.lane.b32.xlu1 %v366_v20, %s1466_s2  ;;  %v1311_v27 = vmul.f32 -1.442695, %v346_v26 }
 0x2d1   :  { %1381 = vpow2.f32 %v1311_v27 }
 0x2d4   :  { %v344_v21 = vpop.f32.mrf.mxu3 }
 0x2d7   :  { %v1382_v29 = vpop.eup %1381 }
 0x2d8   :  { %v350_v31 = vadd.f32 1.0, %v1382_v29 }
 0x2da   :  { %1383 = vrcp.f32 %v350_v31  ;;  %v362_v41 = vand.u32 2147483648, %v350_v31  ;;  %vm356_vm11 = vweird.f32 %v350_v31  ;;  %v360_v42 = vand.u32 2147483647, %v350_v31 }
 0x2dc   :  { %v271_v22 = vpop.f32.mrf.mxu2  ;;  %v363_v45 = vor.u32 1.1754944e-38, %v362_v41  ;;  %vm361_vm13 = vcmp.eq.f32.partialorder %v360_v42, 8.507059e+37 }
 0x2dd   :  { %v295_v23 = vadd.f32 %v271_v22, %v1565_v11  ;;  %v275_v30 = vadd.f32 %v1305_v28, %v271_v22 }
 0x2df   :  { %297 = vrot.lane.b32.xlu0 %v295_v23, %s1466_s2  ;;  %v1307_v32 = vmul.f32 -1.442695, %v275_v30 }
 0x2e0   :  { %v1384_v33 = vpop.eup %1383 }
 0x2e1   :  { %1385 = vpow2.f32 %v1307_v32  ;;  %v352_v35 = vmul.f32 %v1384_v33, %v350_v31  ;;  %vm357_vm10 = vweird.f32 %v1384_v33  ;;  %v1313_v31 = vld [vmem:[%s1869_s0 + $0x4] sm:$0x3] }
 0x2e2   :  { %vm358_vm12 = vmor %vm356_vm11, %vm357_vm10 }
 0x2e3   :  { %v353_v37 = vsub.f32 1.0, %v352_v35 }
 0x2e4   :  { %v273_v24 = vpop.f32.mrf.mxu2 }
 0x2e5   :  { %v354_v38 = vmul.f32 %v1384_v33, %v353_v37 }
 0x2e7   :  { %v1386_v34 = vpop.eup %1385  ;;  %v355_v39 = vadd.f32 %v1384_v33, %v354_v38 }
 0x2e8   :  { %v279_v36 = vadd.f32 1.0, %v1386_v34  ;;  %v1317_v34 = vld [vmem:[%s1870_s1 + $0xa] sm:$0x3] }
 0x2e9   :  { %v359_v43 = vsel %vm358_vm12, %v1384_v33, %v355_v39 }
 0x2ea   :  { %1387 = vrcp.f32 %v279_v36  ;;  %v364_v47 = vsel %vm361_vm13, %v363_v45, %v359_v43  ;;  %v291_v52 = vand.u32 2147483648, %v279_v36  ;;  %vm285_vm15 = vweird.f32 %v279_v36 }
 0x2eb   :  { %v289_v53 = vand.u32 2147483647, %v279_v36  ;;  %v378_v13 = vsub.f32 1.0, %v364_v47 }
 0x2ec   :  { %v292_v55 = vor.u32 1.1754944e-38, %v291_v52 }
 0x2ed   :  { %vm290_vm3 = vcmp.eq.f32.partialorder %v289_v53, 8.507059e+37 }
 0x2f0   :  { %v1388_v40 = vpop.eup %1387 }
 0x2f1   :  { %v281_v44 = vmul.f32 %v1388_v40, %v279_v36  ;;  %vm286_vm14 = vweird.f32 %v1388_v40 }
 0x2f2   :  { %vm287_vm2 = vmor %vm285_vm15, %vm286_vm14 }
 0x2f3   :  { %v282_v49 = vsub.f32 1.0, %v281_v44 }
 0x2f5   :  { %v283_v50 = vmul.f32 %v1388_v40, %v282_v49 }
 0x2f7   :  { %v284_v51 = vadd.f32 %v1388_v40, %v283_v50 }
 0x2f9   :  { %v288_v54 = vsel %vm287_vm2, %v1388_v40, %v284_v51 }
 0x2fa   :  { %v293_v56 = vsel %vm290_vm3, %v292_v55, %v288_v54 }
 0x2fb   :  { %v307_v6 = vsub.f32 1.0, %v293_v56 }
 0x341   :  { %v369_v46 = vpop.permute.xlu1 %368 }
 0x342   :  { %v371_v48 = vmul.f32 %v369_v46, %v364_v47 }
 0x344   :  { %373 = vrot.lane.b32.xlu0 %v371_v48, %s1466_s2 }
 0x351   :  { %v298_v57 = vpop.permute.xlu0 %297 }
 0x352   :  { %v300_v58 = vmul.f32 %v298_v57, %v293_v56 }
 0x354   :  { %302 = vrot.lane.b32.xlu2 %v300_v58, %s1466_s2 }
 0x35c   :  { %314 = vrot.lane.b32.xlu2 %v257_v17, %s1467_s5 }
 0x3ae   :  { %v303_v59 = vpop.permute.xlu2 %302 }
 0x3af   :  { %v305_v60 = vadd.f32 %v1305_v28, %v303_v59 }
 0x3b1   :  { %1389 = vtanh.f32 %v305_v60 }
 0x3b6   :  { %v374_v61 = vpop.permute.xlu0 %373  ;;  %v315_v5 = vpop.permute.xlu2 %314 }
 0x3b7   :  { %v1390_v62 = vpop.eup %1389  ;;  %v376_v63 = vadd.f32 %v1309_v25, %v374_v61  ;;  %v317_v9 = vmul.f32 %v315_v5, %v293_v56 }
 0x3b8   :  { %309 = vrot.lane.b32.xlu1 %v1390_v62, %s1468_s15 }
 0x3b9   :  { %1391 = vtanh.f32 %v376_v63 }
 0x3bf   :  { %v1392_v1 = vpop.eup %1391 }
 0x3c0   :  { %380 = vrot.lane.b32.xlu0 %v1392_v1, %s1468_s15  ;;  %385 = vrot.lane.b32.xlu1 %v1593_v8, %s1467_s5 }
 0x42a   :  { %v310_v7 = vpop.permute.xlu1 %309 }
 0x42b   :  { %v312_v10 = vmul.f32 %v310_v7, %v307_v6 }
 0x42d   :  { %v318_v12 = vadd.f32 %v317_v9, %v312_v10 }
 0x42f   :  { %320 = vrot.lane.b32.xlu2 %v318_v12, %s1468_s15 }
 0x432   :  { %v381_v14 = vpop.permute.xlu0 %380  ;;  %v386_v16 = vpop.permute.xlu1 %385 }
 0x433   :  { %v383_v17 = vmul.f32 %v381_v14, %v378_v13  ;;  %v388_v18 = vmul.f32 %v386_v16, %v364_v47 }
 0x435   :  { %v389_v19 = vadd.f32 %v388_v18, %v383_v17 }
 0x437   :  { %391 = vrot.lane.b32.xlu0 %v389_v19, %s1468_s15 }
 0x489   :  { %v321_v20 = vpop.permute.xlu2 %320 }
 0x48a   :  { %323 = vst.msk [vmem:[#allocation2] sm:$0x3] %vm66_vm0, %v321_v20 }
 0x48b   :  { %1308 = vst.msk [vmem:[%s1872_s6 + $0x2] sm:$0x3] %vm66_vm0, %v321_v20 }
 0x491   :  { %v1632_v8 = vld [vmem:[#allocation2] sm:$0x3] }
 0x492   :  { %v400_v21 = vpack.c.bf16 %v1632_v8, %v1632_v8 }
 0x494   :  { %1314 = vmatmul.msk.bf16.vlgmr.msrb.gmra.mxu0 %vm94_vm1, %v400_v21 }
 0x495   :  { %978 = vmatpush.bf16.msrb.mxu0 %v1512_v0 }
 0x499   :  { %979 = vmatpush.bf16.msrb.mxu0 %v1523_v3 }
 0x4a9   :  { %v392_v22 = vpop.permute.xlu0 %391 }
 0x4aa   :  { %394 = vst.msk [vmem:[#allocation3] sm:$0x3] %vm66_vm0, %v392_v22 }
 0x4ab   :  { %1312 = vst.msk [vmem:[%s1871_s7 + $0xc] sm:$0x3] %vm66_vm0, %v392_v22 }
 0x4b1   :  { %v1644_v23 = vld [vmem:[#allocation3] sm:$0x3] }
 0x4b2   :  { %v471_v24 = vpack.c.bf16 %v1644_v23, %v1644_v23 }
 0x4b4   :  { %1318 = vmatmul.msk.bf16.vlgmr.msrb.gmra.mxu1 %vm94_vm1, %v471_v24 }
 0x4b5   :  { %1049 = vmatpush.bf16.msrb.mxu1 %v1518_v2 }
 0x4b9   :  { %1050 = vmatpush.bf16.msrb.mxu1 %v1531_v4 }
 0x511   :  { %v413_v25 = vpop.f32.mrf.mxu0 }
 0x512   :  { %v437_v26 = vadd.f32 %v413_v25, %v1565_v11  ;;  %v417_v32 = vadd.f32 %v1313_v31, %v413_v25 }
 0x514   :  { %439 = vrot.lane.b32.xlu1 %v437_v26, %s1466_s2  ;;  %v1315_v33 = vmul.f32 -1.442695, %v417_v32 }
 0x516   :  { %1393 = vpow2.f32 %v1315_v33 }
 0x519   :  { %v415_v27 = vpop.f32.mrf.mxu0 }
 0x51c   :  { %v1394_v37 = vpop.eup %1393 }
 0x51d   :  { %v421_v38 = vadd.f32 1.0, %v1394_v37 }
 0x51f   :  { %v433_v49 = vand.u32 2147483648, %v421_v38  ;;  %vm427_vm5 = vweird.f32 %v421_v38  ;;  %v431_v50 = vand.u32 2147483647, %v421_v38 }
 0x521   :  { %v434_v53 = vor.u32 1.1754944e-38, %v433_v49  ;;  %vm432_vm7 = vcmp.eq.f32.partialorder %v431_v50, 8.507059e+37  ;;  %v1325_v50 = vld [vmem:[%s1870_s1 + $0x8] sm:$0x3] }
 0x531   :  { %v484_v28 = vpop.f32.mrf.mxu1 }
 0x532   :  { %v508_v29 = vadd.f32 %v484_v28, %v1569_v15  ;;  %v488_v35 = vadd.f32 %v1317_v34, %v484_v28 }
 0x534   :  { %510 = vrot.lane.b32.xlu2 %v508_v29, %s1466_s2  ;;  %v1319_v36 = vmul.f32 -1.442695, %v488_v35  ;;  %v1321_v35 = vld [vmem:[%s1869_s0 + $0x6] sm:$0x3] }
 0x536   :  { %1395 = vpow2.f32 %v1319_v36 }
 0x537   :  { %1397 = vrcp.f32 %v421_v38 }
 0x539   :  { %v486_v30 = vpop.f32.mrf.mxu1 }
 0x53c   :  { %v1396_v39 = vpop.eup %1395 }
 0x53d   :  { %v492_v40 = vadd.f32 1.0, %v1396_v39  ;;  %v1398_v41 = vpop.eup %1397 }
 0x53e   :  { %v423_v42 = vmul.f32 %v1398_v41, %v421_v38  ;;  %vm428_vm4 = vweird.f32 %v1398_v41 }
 0x53f   :  { %1399 = vrcp.f32 %v492_v40  ;;  %vm429_vm6 = vmor %vm427_vm5, %vm428_vm4  ;;  %v504_v58 = vand.u32 2147483648, %v492_v40  ;;  %vm498_vm9 = vweird.f32 %v492_v40  ;;  %v502_v59 = vand.u32 2147483647, %v492_v40 }
 0x540   :  { %v424_v43 = vsub.f32 1.0, %v423_v42 }
 0x541   :  { %v505_v61 = vor.u32 1.1754944e-38, %v504_v58  ;;  %vm503_vm11 = vcmp.eq.f32.partialorder %v502_v59, 8.507059e+37 }
 0x542   :  { %v425_v45 = vmul.f32 %v1398_v41, %v424_v43 }
 0x544   :  { %v426_v47 = vadd.f32 %v1398_v41, %v425_v45 }
 0x545   :  { %v1400_v44 = vpop.eup %1399 }
 0x546   :  { %v494_v46 = vmul.f32 %v1400_v44, %v492_v40  ;;  %v430_v51 = vsel %vm429_vm6, %v1398_v41, %v426_v47  ;;  %vm499_vm8 = vweird.f32 %v1400_v44 }
 0x547   :  { %v435_v55 = vsel %vm432_vm7, %v434_v53, %v430_v51  ;;  %vm500_vm10 = vmor %vm498_vm9, %vm499_vm8 }
 0x548   :  { %v495_v48 = vsub.f32 1.0, %v494_v46  ;;  %v449_v14 = vsub.f32 1.0, %v435_v55 }
 0x54a   :  { %v496_v52 = vmul.f32 %v1400_v44, %v495_v48 }
 0x54c   :  { %v497_v57 = vadd.f32 %v1400_v44, %v496_v52 }
 0x54e   :  { %v501_v60 = vsel %vm500_vm10, %v1400_v44, %v497_v57 }
 0x54f   :  { %v506_v62 = vsel %vm503_vm11, %v505_v61, %v501_v60 }
 0x586   :  { %v440_v54 = vpop.permute.xlu1 %439 }
 0x587   :  { %v442_v56 = vmul.f32 %v440_v54, %v435_v55 }
 0x589   :  { %444 = vrot.lane.b32.xlu0 %v442_v56, %s1466_s2 }
 0x58e   :  { %v511_v63 = vpop.permute.xlu2 %510 }
 0x58f   :  { %v513_v1 = vmul.f32 %v511_v63, %v506_v62 }
 0x591   :  { %456 = vrot.lane.b32.xlu0 %v1632_v8, %s1467_s5  ;;  %515 = vrot.lane.b32.xlu1 %v513_v1, %s1466_s2  ;;  %v520_v8 = vsub.f32 1.0, %v506_v62 }
 0x5fb   :  { %v445_v5 = vpop.permute.xlu0 %444 }
 0x5fc   :  { %v447_v6 = vadd.f32 %v1313_v31, %v445_v5 }
 0x5fe   :  { %1401 = vtanh.f32 %v447_v6 }
 0x603   :  { %v516_v7 = vpop.permute.xlu1 %515  ;;  %v457_v13 = vpop.permute.xlu0 %456 }
 0x604   :  { %v1402_v9 = vpop.eup %1401  ;;  %v518_v10 = vadd.f32 %v1317_v34, %v516_v7  ;;  %v459_v17 = vmul.f32 %v457_v13, %v435_v55 }
 0x605   :  { %451 = vrot.lane.b32.xlu2 %v1402_v9, %s1468_s15 }
 0x606   :  { %1403 = vtanh.f32 %v518_v10 }
 0x60c   :  { %v1404_v12 = vpop.eup %1403 }
 0x60d   :  { %527 = vrot.lane.b32.xlu2 %v1644_v23, %s1467_s5  ;;  %522 = vrot.lane.b32.xlu1 %v1404_v12, %s1468_s15 }
 0x65f   :  { %v452_v16 = vpop.permute.xlu2 %451 }
 0x660   :  { %v454_v18 = vmul.f32 %v452_v16, %v449_v14 }
 0x662   :  { %v460_v19 = vadd.f32 %v459_v17, %v454_v18 }
 0x664   :  { %462 = vrot.lane.b32.xlu0 %v460_v19, %s1468_s15 }
 0x667   :  { %v528_v20 = vpop.permute.xlu2 %527 }
 0x668   :  { %v530_v22 = vmul.f32 %v528_v20, %v506_v62 }
 0x67f   :  { %v523_v21 = vpop.permute.xlu1 %522 }
 0x680   :  { %v525_v24 = vmul.f32 %v523_v21, %v520_v8 }
 0x682   :  { %v531_v25 = vadd.f32 %v530_v22, %v525_v24 }
 0x684   :  { %533 = vrot.lane.b32.xlu1 %v531_v25, %s1468_s15 }
 0x6d6   :  { %v463_v26 = vpop.permute.xlu0 %462 }
 0x6d7   :  { %465 = vst.msk [vmem:[#allocation2] sm:$0x3] %vm66_vm0, %v463_v26 }
 0x6d8   :  { %1316 = vst.msk [vmem:[%s1872_s6 + $0x4] sm:$0x3] %vm66_vm0, %v463_v26 }
 0x6de   :  { %v541_v23 = vld [vmem:[#allocation2] sm:$0x3] }
 0x6df   :  { %v542_v27 = vpack.c.bf16 %v541_v23, %v541_v23 }
 0x6e1   :  { %1322 = vmatmul.msk.bf16.vlgmr.msrb.gmra.mxu2 %vm94_vm1, %v542_v27 }
 0x6e2   :  { %1120 = vmatpush.bf16.msrb.mxu2 %v1512_v0 }
 0x6e6   :  { %1121 = vmatpush.bf16.msrb.mxu2 %v1523_v3 }
 0x6f6   :  { %v534_v28 = vpop.permute.xlu1 %533 }
 0x6f7   :  { %536 = vst.msk [vmem:[#allocation3] sm:$0x3] %vm66_vm0, %v534_v28 }
 0x6f8   :  { %1320 = vst.msk [vmem:[%s1871_s7 + $0xa] sm:$0x3] %vm66_vm0, %v534_v28 }
 0x6fe   :  { %v1684_v29 = vld [vmem:[#allocation3] sm:$0x3] }
 0x6ff   :  { %v613_v30 = vpack.c.bf16 %v1684_v29, %v1684_v29 }
 0x701   :  { %1326 = vmatmul.msk.bf16.vlgmr.msrb.gmra.mxu3 %vm94_vm1, %v613_v30 }
 0x702   :  { %1190 = vmatpush.bf16.msrb.mxu3 %v1518_v2 }
 0x706   :  { %1191 = vmatpush.bf16.msrb.mxu3 %v1531_v4 }
 0x764   :  { %v555_v0 = vpop.f32.mrf.mxu2 }
 0x765   :  { %v579_v3 = vadd.f32 %v555_v0, %v1565_v11  ;;  %v559_v36 = vadd.f32 %v1321_v35, %v555_v0 }
 0x767   :  { %581 = vrot.lane.b32.xlu2 %v579_v3, %s1466_s2  ;;  %v1323_v2 = vmul.f32 -1.442695, %v559_v36 }
 0x769   :  { %1405 = vpow2.f32 %v1323_v2  ;;  %v1333_v2 = vld [vmem:[%s1870_s1 + $0x6] sm:$0x3] }
 0x76c   :  { %v557_v31 = vpop.f32.mrf.mxu2 }
 0x76f   :  { %v1406_v4 = vpop.eup %1405 }
 0x770   :  { %v563_v37 = vadd.f32 1.0, %v1406_v4 }
 0x772   :  { %1407 = vrcp.f32 %v563_v37  ;;  %v575_v43 = vand.u32 2147483648, %v563_v37  ;;  %vm569_vm13 = vweird.f32 %v563_v37  ;;  %v573_v44 = vand.u32 2147483647, %v563_v37 }
 0x774   :  { %v576_v46 = vor.u32 1.1754944e-38, %v575_v43  ;;  %vm574_vm15 = vcmp.eq.f32.partialorder %v573_v44, 8.507059e+37 }
 0x778   :  { %v1408_v38 = vpop.eup %1407 }
 0x779   :  { %v565_v39 = vmul.f32 %v1408_v38, %v563_v37  ;;  %vm570_vm12 = vweird.f32 %v1408_v38 }
 0x77a   :  { %vm571_vm14 = vmor %vm569_vm13, %vm570_vm12 }
 0x77b   :  { %v566_v40 = vsub.f32 1.0, %v565_v39 }
 0x77d   :  { %v567_v41 = vmul.f32 %v1408_v38, %v566_v40 }
 0x77f   :  { %v568_v42 = vadd.f32 %v1408_v38, %v567_v41 }
 0x781   :  { %v572_v45 = vsel %vm571_vm14, %v1408_v38, %v568_v42  ;;  %v1329_v38 = vld [vmem:[%s1869_s0 + $0x8] sm:$0x3] }
 0x782   :  { %v577_v47 = vsel %vm574_vm15, %v576_v46, %v572_v45 }
 0x783   :  { %v591_v17 = vsub.f32 1.0, %v577_v47 }
 0x784   :  { %v626_v32 = vpop.f32.mrf.mxu3 }
 0x785   :  { %v650_v33 = vadd.f32 %v626_v32, %v1569_v15  ;;  %v630_v51 = vadd.f32 %v1325_v50, %v626_v32 }
 0x787   :  { %652 = vrot.lane.b32.xlu0 %v650_v33, %s1466_s2  ;;  %v1327_v52 = vmul.f32 -1.442695, %v630_v51 }
 0x789   :  { %1409 = vpow2.f32 %v1327_v52 }
 0x78c   :  { %v628_v34 = vpop.f32.mrf.mxu3 }
 0x78f   :  { %v1410_v53 = vpop.eup %1409 }
 0x790   :  { %v634_v54 = vadd.f32 1.0, %v1410_v53 }
 0x792   :  { %1411 = vrcp.f32 %v634_v54  ;;  %v646_v60 = vand.u32 2147483648, %v634_v54  ;;  %vm640_vm3 = vweird.f32 %v634_v54  ;;  %v644_v61 = vand.u32 2147483647, %v634_v54 }
 0x794   :  { %v647_v63 = vor.u32 1.1754944e-38, %v646_v60  ;;  %vm645_vm5 = vcmp.eq.f32.partialorder %v644_v61, 8.507059e+37 }
 0x798   :  { %v1412_v55 = vpop.eup %1411 }
 0x799   :  { %v636_v56 = vmul.f32 %v1412_v55, %v634_v54  ;;  %vm641_vm2 = vweird.f32 %v1412_v55 }
 0x79a   :  { %vm642_vm4 = vmor %vm640_vm3, %vm641_vm2 }
 0x79b   :  { %v637_v57 = vsub.f32 1.0, %v636_v56 }
 0x79d   :  { %v638_v58 = vmul.f32 %v1412_v55, %v637_v57 }
 0x79f   :  { %v639_v59 = vadd.f32 %v1412_v55, %v638_v58 }
 0x7a1   :  { %v643_v62 = vsel %vm642_vm4, %v1412_v55, %v639_v59 }
 0x7a2   :  { %v648_v5 = vsel %vm645_vm5, %v647_v63, %v643_v62 }
 0x7a3   :  { %v662_v21 = vsub.f32 1.0, %v648_v5 }
 0x7c1   :  { %v582_v48 = vpop.permute.xlu2 %581 }
 0x7c2   :  { %v584_v49 = vmul.f32 %v582_v48, %v577_v47 }
 0x7c4   :  { %586 = vrot.lane.b32.xlu1 %v584_v49, %s1466_s2 }
 0x7cc   :  { %598 = vrot.lane.b32.xlu1 %v541_v23, %s1467_s5 }
 0x7f9   :  { %v653_v1 = vpop.permute.xlu0 %652 }
 0x7fa   :  { %v655_v6 = vmul.f32 %v653_v1, %v648_v5 }
 0x7fc   :  { %657 = vrot.lane.b32.xlu2 %v655_v6, %s1466_s2 }
 0x836   :  { %v587_v7 = vpop.permute.xlu1 %586 }
 0x837   :  { %v589_v9 = vadd.f32 %v1321_v35, %v587_v7 }
 0x839   :  { %1413 = vtanh.f32 %v589_v9 }
 0x83e   :  { %v599_v16 = vpop.permute.xlu1 %598 }
 0x83f   :  { %v1414_v10 = vpop.eup %1413  ;;  %v601_v19 = vmul.f32 %v599_v16, %v577_v47 }
 0x840   :  { %593 = vrot.lane.b32.xlu0 %v1414_v10, %s1468_s15 }
 0x848   :  { %669 = vrot.lane.b32.xlu0 %v1684_v29, %s1467_s5 }
 0x856   :  { %v658_v12 = vpop.permute.xlu2 %657 }
 0x857   :  { %v660_v13 = vadd.f32 %v1325_v50, %v658_v12 }
 0x859   :  { %1415 = vtanh.f32 %v660_v13 }
 0x85f   :  { %v1416_v14 = vpop.eup %1415 }
 0x860   :  { %664 = vrot.lane.b32.xlu2 %v1416_v14, %s1468_s15 }
 0x8b2   :  { %v594_v18 = vpop.permute.xlu0 %593 }
 0x8b3   :  { %v596_v20 = vmul.f32 %v594_v18, %v591_v17 }
 0x8b5   :  { %v602_v8 = vadd.f32 %v601_v19, %v596_v20 }
 0x8b7   :  { %604 = vrot.lane.b32.xlu1 %v602_v8, %s1468_s15 }
 0x8ba   :  { %v670_v22 = vpop.permute.xlu0 %669  ;;  %v665_v24 = vpop.permute.xlu2 %664 }
 0x8bb   :  { %v672_v25 = vmul.f32 %v670_v22, %v648_v5  ;;  %v667_v26 = vmul.f32 %v665_v24, %v662_v21 }
 0x8bd   :  { %v673_v23 = vadd.f32 %v672_v25, %v667_v26 }
 0x8bf   :  { %675 = vrot.lane.b32.xlu2 %v673_v23, %s1468_s15 }
 0x919   :  { %v676_v27 = vpop.permute.xlu2 %675 }
 0x91a   :  { %678 = vst.msk [vmem:[#allocation3] sm:$0x3] %vm66_vm0, %v676_v27 }
 0x91b   :  { %1328 = vst.msk [vmem:[%s1871_s7 + $0x8] sm:$0x3] %vm66_vm0, %v676_v27 }
 0x921   :  { %v1715_v28 = vld [vmem:[#allocation3] sm:$0x3] }
 0x922   :  { %v755_v29 = vpack.c.bf16 %v1715_v28, %v1715_v28 }
 0x924   :  { %1334 = vmatmul.msk.bf16.vlgmr.msra.gmra.mxu1 %vm94_vm1, %v755_v29 }
 0x929   :  { %v605_v30 = vpop.permute.xlu1 %604 }
 0x92a   :  { %607 = vst.msk [vmem:[#allocation2] sm:$0x3] %vm66_vm0, %v605_v30 }
 0x92b   :  { %1324 = vst.msk [vmem:[%s1872_s6 + $0x6] sm:$0x3] %vm66_vm0, %v605_v30 }
 0x931   :  { %v683_v0 = vld [vmem:[#allocation2] sm:$0x3] }
 0x932   :  { %v684_v3 = vpack.c.bf16 %v683_v0, %v683_v0 }
 0x934   :  { %1330 = vmatmul.msk.bf16.vlgmr.msra.gmra.mxu0 %vm94_vm1, %v684_v3 }
 0x9a1   :  { %v768_v31 = vpop.f32.mrf.mxu1 }
 0x9a2   :  { %v792_v32 = vadd.f32 %v768_v31, %v1569_v15  ;;  %v772_v4 = vadd.f32 %v1333_v2, %v768_v31 }
 0x9a4   :  { %794 = vrot.lane.b32.xlu1 %v792_v32, %s1466_s2  ;;  %v1335_v37 = vmul.f32 -1.442695, %v772_v4 }
 0x9a6   :  { %1417 = vpow2.f32 %v1335_v37  ;;  %v1337_v37 = vld [vmem:[%s1869_s0 + $0xa] sm:$0x3] }
 0x9a9   :  { %v770_v33 = vpop.f32.mrf.mxu1 }
 0x9ac   :  { %v1418_v39 = vpop.eup %1417 }
 0x9ad   :  { %v776_v41 = vadd.f32 1.0, %v1418_v39 }
 0x9af   :  { %1419 = vrcp.f32 %v776_v41  ;;  %v788_v51 = vand.u32 2147483648, %v776_v41  ;;  %vm782_vm7 = vweird.f32 %v776_v41  ;;  %v786_v52 = vand.u32 2147483647, %v776_v41 }
 0x9b1   :  { %v697_v34 = vpop.f32.mrf.mxu0  ;;  %v789_v55 = vor.u32 1.1754944e-38, %v788_v51  ;;  %vm787_vm9 = vcmp.eq.f32.partialorder %v786_v52, 8.507059e+37 }
 0x9b2   :  { %v721_v35 = vadd.f32 %v697_v34, %v1565_v11  ;;  %v701_v40 = vadd.f32 %v1329_v38, %v697_v34 }
 0x9b4   :  { %723 = vrot.lane.b32.xlu0 %v721_v35, %s1466_s2  ;;  %v1331_v42 = vmul.f32 -1.442695, %v701_v40  ;;  %v1341_v40 = vld [vmem:[%s1870_s1 + $0x4] sm:$0x3] }
 0x9b5   :  { %v1420_v43 = vpop.eup %1419 }
 0x9b6   :  { %1421 = vpow2.f32 %v1331_v42  ;;  %v778_v45 = vmul.f32 %v1420_v43, %v776_v41  ;;  %vm783_vm6 = vweird.f32 %v1420_v43 }
 0x9b7   :  { %vm784_vm8 = vmor %vm782_vm7, %vm783_vm6 }
 0x9b8   :  { %v779_v47 = vsub.f32 1.0, %v778_v45 }
 0x9b9   :  { %v699_v36 = vpop.f32.mrf.mxu0 }
 0x9ba   :  { %v780_v48 = vmul.f32 %v1420_v43, %v779_v47 }
 0x9bc   :  { %v1422_v44 = vpop.eup %1421  ;;  %v781_v49 = vadd.f32 %v1420_v43, %v780_v48 }
 0x9bd   :  { %v705_v46 = vadd.f32 1.0, %v1422_v44 }
 0x9be   :  { %v785_v53 = vsel %vm784_vm8, %v1420_v43, %v781_v49 }
 0x9bf   :  { %1423 = vrcp.f32 %v705_v46  ;;  %v790_v57 = vsel %vm787_vm9, %v789_v55, %v785_v53  ;;  %v717_v62 = vand.u32 2147483648, %v705_v46  ;;  %vm711_vm11 = vweird.f32 %v705_v46 }
 0x9c0   :  { %v715_v63 = vand.u32 2147483647, %v705_v46  ;;  %v804_v24 = vsub.f32 1.0, %v790_v57 }
 0x9c1   :  { %v718_v5 = vor.u32 1.1754944e-38, %v717_v62 }
 0x9c2   :  { %vm716_vm13 = vcmp.eq.f32.partialorder %v715_v63, 8.507059e+37 }
 0x9c5   :  { %v1424_v50 = vpop.eup %1423 }
 0x9c6   :  { %v707_v54 = vmul.f32 %v1424_v50, %v705_v46  ;;  %vm712_vm10 = vweird.f32 %v1424_v50 }
 0x9c7   :  { %vm713_vm12 = vmor %vm711_vm11, %vm712_vm10 }
 0x9c8   :  { %v708_v59 = vsub.f32 1.0, %v707_v54 }
 0x9ca   :  { %v709_v60 = vmul.f32 %v1424_v50, %v708_v59 }
 0x9cc   :  { %v710_v61 = vadd.f32 %v1424_v50, %v709_v60 }
 0x9ce   :  { %v714_v1 = vsel %vm713_vm12, %v1424_v50, %v710_v61 }
 0x9cf   :  { %v719_v7 = vsel %vm716_vm13, %v718_v5, %v714_v1 }
 0x9d0   :  { %v733_v19 = vsub.f32 1.0, %v719_v7 }
 0xa16   :  { %v795_v56 = vpop.permute.xlu1 %794 }
 0xa17   :  { %v797_v58 = vmul.f32 %v795_v56, %v790_v57 }
 0xa19   :  { %799 = vrot.lane.b32.xlu0 %v797_v58, %s1466_s2 }
 0xa26   :  { %v724_v6 = vpop.permute.xlu0 %723 }
 0xa27   :  { %v726_v9 = vmul.f32 %v724_v6, %v719_v7 }
 0xa29   :  { %728 = vrot.lane.b32.xlu2 %v726_v9, %s1466_s2 }
 0xa31   :  { %740 = vrot.lane.b32.xlu2 %v683_v0, %s1467_s5 }
 0xa83   :  { %v729_v10 = vpop.permute.xlu2 %728 }
 0xa84   :  { %v731_v12 = vadd.f32 %v1329_v38, %v729_v10 }
 0xa86   :  { %1425 = vtanh.f32 %v731_v12 }
 0xa8b   :  { %v800_v13 = vpop.permute.xlu0 %799  ;;  %v741_v18 = vpop.permute.xlu2 %740 }
 0xa8c   :  { %v1426_v14 = vpop.eup %1425  ;;  %v802_v16 = vadd.f32 %v1333_v2, %v800_v13  ;;  %v743_v8 = vmul.f32 %v741_v18, %v719_v7 }
 0xa8d   :  { %735 = vrot.lane.b32.xlu1 %v1426_v14, %s1468_s15 }
 0xa8e   :  { %1427 = vtanh.f32 %v802_v16 }
 0xa94   :  { %v1428_v17 = vpop.eup %1427 }
 0xa95   :  { %806 = vrot.lane.b32.xlu0 %v1428_v17, %s1468_s15  ;;  %811 = vrot.lane.b32.xlu1 %v1715_v28, %s1467_s5 }
 0xaff   :  { %v736_v20 = vpop.permute.xlu1 %735 }
 0xb00   :  { %v738_v21 = vmul.f32 %v736_v20, %v733_v19 }
 0xb02   :  { %v744_v22 = vadd.f32 %v743_v8, %v738_v21 }
 0xb04   :  { %746 = vrot.lane.b32.xlu2 %v744_v22, %s1468_s15 }
 0xb07   :  { %v807_v25 = vpop.permute.xlu0 %806  ;;  %v812_v26 = vpop.permute.xlu1 %811 }
 0xb08   :  { %v809_v23 = vmul.f32 %v807_v25, %v804_v24  ;;  %v814_v27 = vmul.f32 %v812_v26, %v790_v57 }
 0xb0a   :  { %v815_v29 = vadd.f32 %v814_v27, %v809_v23 }
 0xb0c   :  { %817 = vrot.lane.b32.xlu0 %v815_v29, %s1468_s15 }
 0xb5e   :  { %v747_v30 = vpop.permute.xlu2 %746 }
 0xb5f   :  { %749 = vst.msk [vmem:[#allocation2] sm:$0x3] %vm66_vm0, %v747_v30 }
 0xb60   :  { %1332 = vst.msk [vmem:[%s1872_s6 + $0x8] sm:$0x3] %vm66_vm0, %v747_v30 }
 0xb66   :  { %v1750_v28 = vld [vmem:[#allocation2] sm:$0x3] }
 0xb67   :  { %v826_v0 = vpack.c.bf16 %v1750_v28, %v1750_v28 }
 0xb69   :  { %1338 = vmatmul.msk.bf16.vlgmr.msra.gmra.mxu2 %vm94_vm1, %v826_v0 }
 0xb7e   :  { %v818_v3 = vpop.permute.xlu0 %817 }
 0xb7f   :  { %820 = vst.msk [vmem:[#allocation3] sm:$0x3] %vm66_vm0, %v818_v3 }
 0xb80   :  { %1336 = vst.msk [vmem:[%s1871_s7 + $0x6] sm:$0x3] %vm66_vm0, %v818_v3 }
 0xb86   :  { %v1760_v31 = vld [vmem:[#allocation3] sm:$0x3] }
 0xb87   :  { %v897_v32 = vpack.c.bf16 %v1760_v31, %v1760_v31 }
 0xb89   :  { %1342 = vmatmul.msk.bf16.vlgmr.msra.gmra.mxu3 %vm94_vm1, %v897_v32 }
 0xbec   :  { %v839_v33 = vpop.f32.mrf.mxu2 }
 0xbed   :  { %v863_v34 = vadd.f32 %v839_v33, %v1565_v11  ;;  %v843_v38 = vadd.f32 %v1337_v37, %v839_v33 }
 0xbef   :  { %865 = vrot.lane.b32.xlu1 %v863_v34, %s1466_s2  ;;  %v1339_v39 = vmul.f32 -1.442695, %v843_v38 }
 0xbf1   :  { %1429 = vpow2.f32 %v1339_v39  ;;  %v1345_v39 = vld [vmem:[%s1869_s0 + $0xc] sm:$0x3] }
 0xbf4   :  { %v841_v35 = vpop.f32.mrf.mxu2 }
 0xbf7   :  { %v1430_v43 = vpop.eup %1429 }
 0xbf8   :  { %v847_v44 = vadd.f32 1.0, %v1430_v43 }
 0xbfa   :  { %v859_v55 = vand.u32 2147483648, %v847_v44  ;;  %vm853_vm15 = vweird.f32 %v847_v44  ;;  %v857_v56 = vand.u32 2147483647, %v847_v44 }
 0xbfc   :  { %v860_v59 = vor.u32 1.1754944e-38, %v859_v55  ;;  %vm858_vm3 = vcmp.eq.f32.partialorder %v857_v56, 8.507059e+37  ;;  %v1349_v56 = vld [vmem:[%s1870_s1 + $0x2] sm:$0x3] }
 0xc0c   :  { %v910_v36 = vpop.f32.mrf.mxu3 }
 0xc0d   :  { %v934_v2 = vadd.f32 %v910_v36, %v1569_v15  ;;  %v914_v41 = vadd.f32 %v1341_v40, %v910_v36 }
 0xc0f   :  { %936 = vrot.lane.b32.xlu2 %v934_v2, %s1466_s2  ;;  %v1343_v42 = vmul.f32 -1.442695, %v914_v41 }
 0xc11   :  { %1431 = vpow2.f32 %v1343_v42 }
 0xc12   :  { %1433 = vrcp.f32 %v847_v44 }
 0xc14   :  { %v912_v4 = vpop.f32.mrf.mxu3 }
 0xc17   :  { %v1432_v45 = vpop.eup %1431 }
 0xc18   :  { %v918_v46 = vadd.f32 1.0, %v1432_v45  ;;  %v1434_v47 = vpop.eup %1433 }
 0xc19   :  { %v849_v48 = vmul.f32 %v1434_v47, %v847_v44  ;;  %vm854_vm14 = vweird.f32 %v1434_v47 }
 0xc1a   :  { %1435 = vrcp.f32 %v918_v46  ;;  %vm855_vm2 = vmor %vm853_vm15, %vm854_vm14  ;;  %v930_v1 = vand.u32 2147483648, %v918_v46  ;;  %vm924_vm5 = vweird.f32 %v918_v46  ;;  %v928_v5 = vand.u32 2147483647, %v918_v46 }
 0xc1b   :  { %v850_v49 = vsub.f32 1.0, %v849_v48 }
 0xc1c   :  { %v931_v7 = vor.u32 1.1754944e-38, %v930_v1  ;;  %vm929_vm7 = vcmp.eq.f32.partialorder %v928_v5, 8.507059e+37 }
 0xc1d   :  { %v851_v51 = vmul.f32 %v1434_v47, %v850_v49 }
 0xc1f   :  { %v852_v53 = vadd.f32 %v1434_v47, %v851_v51 }
 0xc20   :  { %v1436_v50 = vpop.eup %1435 }
 0xc21   :  { %v920_v52 = vmul.f32 %v1436_v50, %v918_v46  ;;  %v856_v57 = vsel %vm855_vm2, %v1434_v47, %v852_v53  ;;  %vm925_vm4 = vweird.f32 %v1436_v50 }
 0xc22   :  { %v861_v61 = vsel %vm858_vm3, %v860_v59, %v856_v57  ;;  %vm926_vm6 = vmor %vm924_vm5, %vm925_vm4 }
 0xc23   :  { %v921_v54 = vsub.f32 1.0, %v920_v52  ;;  %v875_v8 = vsub.f32 1.0, %v861_v61 }
 0xc25   :  { %v922_v58 = vmul.f32 %v1436_v50, %v921_v54 }
 0xc27   :  { %v923_v63 = vadd.f32 %v1436_v50, %v922_v58 }
 0xc29   :  { %v927_v6 = vsel %vm926_vm6, %v1436_v50, %v923_v63 }
 0xc2a   :  { %v932_v9 = vsel %vm929_vm7, %v931_v7, %v927_v6 }
 0xc2b   :  { %v946_v23 = vsub.f32 1.0, %v932_v9 }
 0xc61   :  { %v866_v60 = vpop.permute.xlu1 %865 }
 0xc62   :  { %v868_v62 = vmul.f32 %v866_v60, %v861_v61 }
 0xc64   :  { %870 = vrot.lane.b32.xlu0 %v868_v62, %s1466_s2 }
 0xc69   :  { %v937_v10 = vpop.permute.xlu2 %936 }
 0xc6a   :  { %v939_v12 = vmul.f32 %v937_v10, %v932_v9 }
 0xc6c   :  { %882 = vrot.lane.b32.xlu0 %v1750_v28, %s1467_s5  ;;  %941 = vrot.lane.b32.xlu1 %v939_v12, %s1466_s2 }
 0xcd6   :  { %v871_v13 = vpop.permute.xlu0 %870 }
 0xcd7   :  { %v873_v14 = vadd.f32 %v1337_v37, %v871_v13 }
 0xcd9   :  { %1437 = vtanh.f32 %v873_v14 }
 0xcde   :  { %v942_v16 = vpop.permute.xlu1 %941  ;;  %v883_v20 = vpop.permute.xlu0 %882 }
 0xcdf   :  { %v1438_v17 = vpop.eup %1437  ;;  %v944_v18 = vadd.f32 %v1341_v40, %v942_v16  ;;  %v885_v22 = vmul.f32 %v883_v20, %v861_v61 }
 0xce0   :  { %877 = vrot.lane.b32.xlu2 %v1438_v17, %s1468_s15 }
 0xce1   :  { %1439 = vtanh.f32 %v944_v18 }
 0xce7   :  { %v1440_v19 = vpop.eup %1439 }
 0xce8   :  { %953 = vrot.lane.b32.xlu2 %v1760_v31, %s1467_s5  ;;  %948 = vrot.lane.b32.xlu1 %v1440_v19, %s1468_s15 }
 0xd3a   :  { %v878_v21 = vpop.permute.xlu2 %877 }
 0xd3b   :  { %v880_v24 = vmul.f32 %v878_v21, %v875_v8 }
 0xd3d   :  { %v886_v25 = vadd.f32 %v885_v22, %v880_v24 }
 0xd3f   :  { %888 = vrot.lane.b32.xlu0 %v886_v25, %s1468_s15 }
 0xd42   :  { %v954_v26 = vpop.permute.xlu2 %953 }
 0xd43   :  { %v956_v29 = vmul.f32 %v954_v26, %v932_v9 }
 0xd5a   :  { %v949_v27 = vpop.permute.xlu1 %948 }
 0xd5b   :  { %v951_v30 = vmul.f32 %v949_v27, %v946_v23 }
 0xd5d   :  { %v957_v28 = vadd.f32 %v956_v29, %v951_v30 }
 0xd5f   :  { %959 = vrot.lane.b32.xlu1 %v957_v28, %s1468_s15 }
 0xdb1   :  { %v889_v0 = vpop.permute.xlu0 %888 }
 0xdb2   :  { %891 = vst.msk [vmem:[#allocation2] sm:$0x3] %vm66_vm0, %v889_v0 }
 0xdb3   :  { %1340 = vst.msk [vmem:[%s1872_s6 + $0xa] sm:$0x3] %vm66_vm0, %v889_v0 }
 0xdb9   :  { %v967_v3 = vld [vmem:[#allocation2] sm:$0x3] }
 0xdba   :  { %v968_v31 = vpack.c.bf16 %v967_v3, %v967_v3 }
 0xdbc   :  { %1346 = vmatmul.msk.bf16.vlgmr.msrb.gmra.mxu0 %vm94_vm1, %v968_v31 }
 0xdd1   :  { %v960_v32 = vpop.permute.xlu1 %959 }
 0xdd2   :  { %962 = vst.msk [vmem:[#allocation3] sm:$0x3] %vm66_vm0, %v960_v32 }
 0xdd3   :  { %1344 = vst.msk [vmem:[%s1871_s7 + $0x4] sm:$0x3] %vm66_vm0, %v960_v32 }
 0xdd9   :  { %v1796_v33 = vld [vmem:[#allocation3] sm:$0x3] }
 0xdda   :  { %v1039_v34 = vpack.c.bf16 %v1796_v33, %v1796_v33 }
 0xddc   :  { %1350 = vmatmul.msk.bf16.vlgmr.msrb.gmra.mxu1 %vm94_vm1, %v1039_v34 }
 0xe39   :  { %v981_v35 = vpop.f32.mrf.mxu0 }
 0xe3a   :  { %v1005_v36 = vadd.f32 %v981_v35, %v1565_v11  ;;  %v985_v40 = vadd.f32 %v1345_v39, %v981_v35 }
 0xe3c   :  { %1007 = vrot.lane.b32.xlu2 %v1005_v36, %s1466_s2  ;;  %v1347_v41 = vmul.f32 -1.442695, %v985_v40 }
 0xe3e   :  { %1441 = vpow2.f32 %v1347_v41  ;;  %v1178_v41 = vld [vmem:[%s1870_s1] sm:$0x3] }
 0xe41   :  { %v983_v2 = vpop.f32.mrf.mxu0 }
 0xe44   :  { %v1442_v42 = vpop.eup %1441 }
 0xe45   :  { %v989_v43 = vadd.f32 1.0, %v1442_v42 }
 0xe47   :  { %1443 = vrcp.f32 %v989_v43  ;;  %v1001_v49 = vand.u32 2147483648, %v989_v43  ;;  %vm995_vm9 = vweird.f32 %v989_v43  ;;  %v999_v50 = vand.u32 2147483647, %v989_v43 }
 0xe49   :  { %v1002_v52 = vor.u32 1.1754944e-38, %v1001_v49  ;;  %vm1000_vm11 = vcmp.eq.f32.partialorder %v999_v50, 8.507059e+37 }
 0xe4d   :  { %v1444_v44 = vpop.eup %1443 }
 0xe4e   :  { %v991_v45 = vmul.f32 %v1444_v44, %v989_v43  ;;  %vm996_vm8 = vweird.f32 %v1444_v44 }
 0xe4f   :  { %vm997_vm10 = vmor %vm995_vm9, %vm996_vm8 }
 0xe50   :  { %v992_v46 = vsub.f32 1.0, %v991_v45 }
 0xe52   :  { %v993_v47 = vmul.f32 %v1444_v44, %v992_v46 }
 0xe54   :  { %v994_v48 = vadd.f32 %v1444_v44, %v993_v47 }
 0xe56   :  { %v998_v51 = vsel %vm997_vm10, %v1444_v44, %v994_v48 }
 0xe57   :  { %v1003_v53 = vsel %vm1000_vm11, %v1002_v52, %v998_v51 }
 0xe58   :  { %v1017_v22 = vsub.f32 1.0, %v1003_v53 }
 0xe59   :  { %v1052_v4 = vpop.f32.mrf.mxu1 }
 0xe5a   :  { %v1076_v37 = vadd.f32 %v1052_v4, %v1569_v15  ;;  %v1056_v57 = vadd.f32 %v1349_v56, %v1052_v4 }
 0xe5c   :  { %1078 = vrot.lane.b32.xlu0 %v1076_v37, %s1466_s2  ;;  %v1351_v58 = vmul.f32 -1.442695, %v1056_v57 }
 0xe5e   :  { %1445 = vpow2.f32 %v1351_v58 }
 0xe61   :  { %v1054_v38 = vpop.f32.mrf.mxu1 }
 0xe64   :  { %v1446_v59 = vpop.eup %1445 }
 0xe65   :  { %v1060_v60 = vadd.f32 1.0, %v1446_v59 }
 0xe67   :  { %1447 = vrcp.f32 %v1060_v60  ;;  %v1072_v6 = vand.u32 2147483648, %v1060_v60  ;;  %vm1066_vm13 = vweird.f32 %v1060_v60  ;;  %v1070_v7 = vand.u32 2147483647, %v1060_v60 }
 0xe69   :  { %v1073_v10 = vor.u32 1.1754944e-38, %v1072_v6  ;;  %vm1071_vm15 = vcmp.eq.f32.partialorder %v1070_v7, 8.507059e+37 }
 0xe6d   :  { %v1448_v61 = vpop.eup %1447 }
 0xe6e   :  { %v1062_v62 = vmul.f32 %v1448_v61, %v1060_v60  ;;  %vm1067_vm12 = vweird.f32 %v1448_v61 }
 0xe6f   :  { %vm1068_vm14 = vmor %vm1066_vm13, %vm1067_vm12 }
 0xe70   :  { %v1063_v63 = vsub.f32 1.0, %v1062_v62 }
 0xe72   :  { %v1064_v1 = vmul.f32 %v1448_v61, %v1063_v63 }
 0xe74   :  { %v1065_v5 = vadd.f32 %v1448_v61, %v1064_v1 }
 0xe76   :  { %v1069_v9 = vsel %vm1068_vm14, %v1448_v61, %v1065_v5 }
 0xe77   :  { %v1074_v13 = vsel %vm1071_vm15, %v1073_v10, %v1069_v9 }
 0xe78   :  { %v1088_v27 = vsub.f32 1.0, %v1074_v13 }
 0xe96   :  { %v1008_v54 = vpop.permute.xlu2 %1007 }
 0xe97   :  { %v1010_v55 = vmul.f32 %v1008_v54, %v1003_v53 }
 0xe99   :  { %1012 = vrot.lane.b32.xlu1 %v1010_v55, %s1466_s2 }
 0xea1   :  { %1024 = vrot.lane.b32.xlu1 %v967_v3, %s1467_s5 }
 0xece   :  { %v1079_v12 = vpop.permute.xlu0 %1078 }
 0xecf   :  { %v1081_v14 = vmul.f32 %v1079_v12, %v1074_v13 }
 0xed1   :  { %1083 = vrot.lane.b32.xlu2 %v1081_v14, %s1466_s2 }
 0xf0b   :  { %v1013_v16 = vpop.permute.xlu1 %1012 }
 0xf0c   :  { %v1015_v17 = vadd.f32 %v1345_v39, %v1013_v16 }
 0xf0e   :  { %1449 = vtanh.f32 %v1015_v17 }
 0xf13   :  { %v1025_v21 = vpop.permute.xlu1 %1024 }
 0xf14   :  { %v1450_v18 = vpop.eup %1449  ;;  %v1027_v25 = vmul.f32 %v1025_v21, %v1003_v53 }
 0xf15   :  { %1019 = vrot.lane.b32.xlu0 %v1450_v18, %s1468_s15 }
 0xf1d   :  { %1095 = vrot.lane.b32.xlu0 %v1796_v33, %s1467_s5 }
 0xf2b   :  { %v1084_v19 = vpop.permute.xlu2 %1083 }
 0xf2c   :  { %v1086_v20 = vadd.f32 %v1349_v56, %v1084_v19 }
 0xf2e   :  { %1451 = vtanh.f32 %v1086_v20 }
 0xf34   :  { %v1452_v8 = vpop.eup %1451 }
 0xf35   :  { %1090 = vrot.lane.b32.xlu2 %v1452_v8, %s1468_s15 }
 0xf87   :  { %v1020_v24 = vpop.permute.xlu0 %1019 }
 0xf88   :  { %v1022_v26 = vmul.f32 %v1020_v24, %v1017_v22 }
 0xf8a   :  { %v1028_v23 = vadd.f32 %v1027_v25, %v1022_v26 }
 0xf8c   :  { %1030 = vrot.lane.b32.xlu1 %v1028_v23, %s1468_s15 }
 0xf8f   :  { %v1096_v29 = vpop.permute.xlu0 %1095  ;;  %v1091_v30 = vpop.permute.xlu2 %1090 }
 0xf90   :  { %v1098_v28 = vmul.f32 %v1096_v29, %v1074_v13  ;;  %v1093_v0 = vmul.f32 %v1091_v30, %v1088_v27 }
 0xf92   :  { %v1099_v3 = vadd.f32 %v1098_v28, %v1093_v0 }
 0xf94   :  { %1101 = vrot.lane.b32.xlu2 %v1099_v3, %s1468_s15 }
 0xfee   :  { %v1102_v31 = vpop.permute.xlu2 %1101 }
 0xfef   :  { %1104 = vst.msk [vmem:[#allocation3] sm:$0x3] %vm66_vm0, %v1102_v31 }
 0xff0   :  { %1352 = vst.msk [vmem:[%s1871_s7 + $0x2] sm:$0x3] %vm66_vm0, %v1102_v31 }
 0xff6   :  { %v1825_v32 = vld [vmem:[#allocation3] sm:$0x3] }
 0xff7   :  { %v1180_v33 = vpack.c.bf16 %v1825_v32, %v1825_v32 }
 0xff9   :  { %1357 = vmatmul.msk.bf16.vlgmr.msrb.gmra.mxu3 %vm94_vm1, %v1180_v33 }
 0xffe   :  { %v1031_v34 = vpop.permute.xlu1 %1030 }
 0xfff   :  { %1033 = vst.msk [vmem:[#allocation2] sm:$0x3] %vm66_vm0, %v1031_v34 }
0x1000   :  { %1348 = vst.msk [vmem:[%s1872_s6 + $0xc] sm:$0x3] %vm66_vm0, %v1031_v34 }
0x1006   :  { %v1109_v35 = vld [vmem:[#allocation2] sm:$0x3] }
0x1007   :  { %v1110_v36 = vpack.c.bf16 %v1109_v35, %v1109_v35 }
0x1009   :  { %1354 = vmatmul.msk.bf16.vlgmr.msrb.gmra.mxu2 %vm94_vm1, %v1110_v36 }
0x107c   :  { %v1193_v2 = vpop.f32.mrf.mxu3 }
0x107d   :  { %v1217_v4 = vadd.f32 %v1193_v2, %v1569_v15  ;;  %v1197_v42 = vadd.f32 %v1193_v2, %v1178_v41  ;;  %v1353_v15 = vld [vmem:[%s1869_s0 + $0xe] sm:$0x3] }
0x107f   :  { %1219 = vrot.lane.b32.xlu1 %v1217_v4, %s1466_s2  ;;  %v1358_v43 = vmul.f32 -1.442695, %v1197_v42 }
0x1081   :  { %1453 = vpow2.f32 %v1358_v43 }
0x1084   :  { %v1195_v37 = vpop.f32.mrf.mxu3 }
0x1087   :  { %v1454_v44 = vpop.eup %1453 }
0x1088   :  { %v1201_v46 = vadd.f32 1.0, %v1454_v44 }
0x108a   :  { %1455 = vrcp.f32 %v1201_v46  ;;  %v1213_v55 = vand.u32 2147483648, %v1201_v46  ;;  %vm1207_vm2 = vweird.f32 %v1201_v46  ;;  %v1211_v56 = vand.u32 2147483647, %v1201_v46 }
0x108c   :  { %v1123_v38 = vpop.f32.mrf.mxu2  ;;  %v1214_v59 = vor.u32 1.1754944e-38, %v1213_v55  ;;  %vm1212_vm4 = vcmp.eq.f32.partialorder %v1211_v56, 8.507059e+37 }
0x108d   :  { %v1147_v39 = vadd.f32 %v1123_v38, %v1565_v11  ;;  %v1127_v45 = vadd.f32 %v1353_v15, %v1123_v38 }
0x108f   :  { %1149 = vrot.lane.b32.xlu0 %v1147_v39, %s1466_s2  ;;  %v1355_v47 = vmul.f32 -1.442695, %v1127_v45 }
0x1090   :  { %v1456_v11 = vpop.eup %1455 }
0x1091   :  { %1457 = vpow2.f32 %v1355_v47  ;;  %v1203_v49 = vmul.f32 %v1456_v11, %v1201_v46  ;;  %vm1208_vm1 = vweird.f32 %v1456_v11 }
0x1092   :  { %vm1209_vm3 = vmor %vm1207_vm2, %vm1208_vm1 }
0x1093   :  { %v1204_v51 = vsub.f32 1.0, %v1203_v49 }
0x1094   :  { %v1125_v40 = vpop.f32.mrf.mxu2 }
0x1095   :  { %v1205_v52 = vmul.f32 %v1456_v11, %v1204_v51 }
0x1097   :  { %v1458_v48 = vpop.eup %1457  ;;  %v1206_v53 = vadd.f32 %v1456_v11, %v1205_v52 }
0x1098   :  { %v1131_v50 = vadd.f32 1.0, %v1458_v48 }
0x1099   :  { %v1210_v57 = vsel %vm1209_vm3, %v1456_v11, %v1206_v53 }
0x109a   :  { %1459 = vrcp.f32 %v1131_v50  ;;  %v1215_v61 = vsel %vm1212_vm4, %v1214_v59, %v1210_v57  ;;  %v1143_v6 = vand.u32 2147483648, %v1131_v50  ;;  %vm1137_vm6 = vweird.f32 %v1131_v50 }
0x109b   :  { %v1141_v7 = vand.u32 2147483647, %v1131_v50  ;;  %v1229_v27 = vsub.f32 1.0, %v1215_v61 }
0x109c   :  { %v1144_v10 = vor.u32 1.1754944e-38, %v1143_v6 }
0x109d   :  { %vm1142_vm8 = vcmp.eq.f32.partialorder %v1141_v7, 8.507059e+37 }
0x10a0   :  { %v1460_v54 = vpop.eup %1459 }
0x10a1   :  { %v1133_v58 = vmul.f32 %v1460_v54, %v1131_v50  ;;  %vm1138_vm5 = vweird.f32 %v1460_v54 }
0x10a2   :  { %vm1139_vm7 = vmor %vm1137_vm6, %vm1138_vm5 }
0x10a3   :  { %v1134_v63 = vsub.f32 1.0, %v1133_v58 }
0x10a5   :  { %v1135_v1 = vmul.f32 %v1460_v54, %v1134_v63 }
0x10a7   :  { %v1136_v5 = vadd.f32 %v1460_v54, %v1135_v1 }
0x10a9   :  { %v1140_v9 = vsel %vm1139_vm7, %v1460_v54, %v1136_v5 }
0x10aa   :  { %v1145_v13 = vsel %vm1142_vm8, %v1144_v10, %v1140_v9 }
0x10ab   :  { %v1159_v22 = vsub.f32 1.0, %v1145_v13 }
0x10f1   :  { %v1220_v60 = vpop.permute.xlu1 %1219 }
0x10f2   :  { %v1222_v62 = vmul.f32 %v1220_v60, %v1215_v61 }
0x10f4   :  { %1224 = vrot.lane.b32.xlu0 %v1222_v62, %s1466_s2 }
0x1101   :  { %v1150_v12 = vpop.permute.xlu0 %1149 }
0x1102   :  { %v1152_v14 = vmul.f32 %v1150_v12, %v1145_v13 }
0x1104   :  { %1154 = vrot.lane.b32.xlu2 %v1152_v14, %s1466_s2 }
0x110c   :  { %1166 = vrot.lane.b32.xlu2 %v1109_v35, %s1467_s5 }
0x115e   :  { %v1155_v16 = vpop.permute.xlu2 %1154 }
0x115f   :  { %v1157_v17 = vadd.f32 %v1353_v15, %v1155_v16 }
0x1161   :  { %1461 = vtanh.f32 %v1157_v17 }
0x1166   :  { %v1225_v18 = vpop.permute.xlu0 %1224  ;;  %v1167_v21 = vpop.permute.xlu2 %1166 }
0x1167   :  { %v1462_v19 = vpop.eup %1461  ;;  %v1227_v20 = vadd.f32 %v1225_v18, %v1178_v41  ;;  %v1169_v25 = vmul.f32 %v1167_v21, %v1145_v13 }
0x1168   :  { %1161 = vrot.lane.b32.xlu1 %v1462_v19, %s1468_s15 }
0x1169   :  { %1463 = vtanh.f32 %v1227_v20 }
0x116f   :  { %v1464_v8 = vpop.eup %1463 }
0x1170   :  { %1231 = vrot.lane.b32.xlu0 %v1464_v8, %s1468_s15  ;;  %1236 = vrot.lane.b32.xlu1 %v1825_v32, %s1467_s5 }
0x11da   :  { %v1162_v24 = vpop.permute.xlu1 %1161 }
0x11db   :  { %v1164_v26 = vmul.f32 %v1162_v24, %v1159_v22 }
0x11dd   :  { %v1170_v23 = vadd.f32 %v1169_v25, %v1164_v26 }
0x11df   :  { %1172 = vrot.lane.b32.xlu2 %v1170_v23, %s1468_s15 }
0x11e2   :  { %v1232_v29 = vpop.permute.xlu0 %1231  ;;  %v1237_v30 = vpop.permute.xlu1 %1236 }
0x11e3   :  { %v1234_v28 = vmul.f32 %v1232_v29, %v1229_v27  ;;  %v1239_v0 = vmul.f32 %v1237_v30, %v1215_v61 }
0x11e5   :  { %v1240_v3 = vadd.f32 %v1239_v0, %v1234_v28 }
0x11e7   :  { %1242 = vrot.lane.b32.xlu0 %v1240_v3, %s1468_s15 }
0x1239   :  { %v1173_v31 = vpop.permute.xlu2 %1172 }
0x123a   :  { %1175 = vst.msk [vmem:[#allocation2] sm:$0x3] %vm66_vm0, %v1173_v31 }
0x123b   :  { %1356 = vst.msk [vmem:[%s1872_s6 + $0xe] sm:$0x3] %vm66_vm0, %v1173_v31 }
0x1259   :  { %v1243_v32 = vpop.permute.xlu0 %1242 }
0x125a   :  { %1245 = vst.msk [vmem:[#allocation3] sm:$0x3] %vm66_vm0, %v1243_v32 }
0x125b   :  { %1246 = vst.msk [vmem:[%s1871_s7] sm:$0x3] %vm66_vm0, %v1243_v32 }

</bundles_post_ra>
